<compile_context>
chip_gen: v7x
topology: tpu7x:2x2x1
jax: 0.10.0
libtpu: 0.0.40
codegen_flags: <defaults>
</compile_context>

<pallas_src>
import functools
import numpy as np

import jax
import jax.numpy as jnp
from jax.experimental import pallas as pl
from jax.experimental.pallas import tpu as pltpu

LANE = 128  # TPU lane width; points map to the lane axis


def _recip(x):
    # approx reciprocal lands in the otherwise-idle EUP slot
    if hasattr(pl, "reciprocal"):
        return pl.reciprocal(x, approx=True)
    return 1.0 / x


# ----------------------------------------------------------------------------
# Pallas kernel: per-point hot path of one TutteLayer (+ back-rotation and
# distortion composition of TutteVaryingNormal).
# ----------------------------------------------------------------------------
def _tutte_layer_kernel(r_ref, in_ref, prev_ref, out_ref, total_ref):
    # r_ref     : (3,3)        f32 SMEM   per-layer normal (rotation) matrix
    # in_ref    : (15, TG,128) f32 VMEM   rot x,y,z | orig tri Ax..Cy | embedded tri Ax..Cy
    # prev_ref  : (9,  TG,128) f32 VMEM   running total distortion (row-major 3x3)
    # out_ref   : (9,  TG,128) f32 VMEM   pred(2) | new 3-D points(3) | 2x2 distortion(4)
    # total_ref : (9,  TG,128) f32 VMEM   new running distortion (aliased with prev input)
    R = [[r_ref[i, j] for j in range(3)] for i in range(3)]

    x, y, z = in_ref[0], in_ref[1], in_ref[2]
    ax, ay = in_ref[3], in_ref[4]
    bx, by = in_ref[5], in_ref[6]
    cx, cy = in_ref[7], in_ref[8]
    qax, qay = in_ref[9], in_ref[10]
    qbx, qby = in_ref[11], in_ref[12]
    qcx, qcy = in_ref[13], in_ref[14]

    # --- barycentric areas (TutteLayer.get_areas) ---
    area_a = jnp.abs((x - bx) * (y - cy) - (y - by) * (x - cx)) * 0.5
    area_b = jnp.abs((x - ax) * (y - cy) - (y - ay) * (x - cx)) * 0.5
    area_c = jnp.abs((x - ax) * (y - by) - (y - ay) * (x - bx)) * 0.5
    # NOTE: no epsilon, matching the torch reference (degenerate triangles would
    # also produce inf/NaN there).
    inv_tot = _recip(area_a + area_b + area_c)

    # --- Tutte map of the point (get_tutte_from_triangle) ---
    px = (qax * area_a + qbx * area_b + qcx * area_c) * inv_tot
    py = (qay * area_a + qby * area_b + qcy * area_c) * inv_tot
    out_ref[0] = px
    out_ref[1] = py

    # --- back-rotation: new_points = R^T @ [px, py, z] ---
    for d in range(3):
        out_ref[2 + d] = R[0][d] * px + R[1][d] * py + R[2][d] * z

    # --- per-triangle affine Jacobian (compute_distortion, closed form of the
    #     reference's 6x6 solve): M = [q1-q0 | q2-q0] @ inv([p1-p0 | p2-p0]) ---
    e1x = bx - ax; e1y = by - ay
    e2x = cx - ax; e2y = cy - ay
    f1x = qbx - qax; f1y = qby - qay
    f2x = qcx - qax; f2y = qcy - qay
    invdet = _recip(e1x * e2y - e2x * e1y)
    m00 = (f1x * e2y - f2x * e1y) * invdet
    m01 = (f2x * e1x - f1x * e2x) * invdet
    m10 = (f1y * e2y - f2y * e1y) * invdet
    m11 = (f2y * e1x - f1y * e2x) * invdet
    out_ref[5] = m00
    out_ref[6] = m01
    out_ref[7] = m10
    out_ref[8] = m11

    # --- distortion composition: cur = R^T @ diag(M,1) @ R ; total = cur @ prev ---
    M = [[m00, m01], [m10, m11]]
    t1 = [[M[i][0] * R[0][j] + M[i][1] * R[1][j] for j in range(3)]
          for i in range(2)]
    cur = [[R[0][i] * t1[0][j] + R[1][i] * t1[1][j] + R[2][i] * R[2][j]
            for j in range(3)] for i in range(3)]
    prev = [[prev_ref[3 * i + j] for j in range(3)] for i in range(3)]
    for i in range(3):
        for j in range(3):
            total_ref[3 * i + j] = (cur[i][0] * prev[0][j]
                                    + cur[i][1] * prev[1][j]
                                    + cur[i][2] * prev[2][j])


def _tile_groups(G):
    """Largest tile (in 128-point groups) <=256 (32k pts, v7x-VMEM safe) that
    divides G and leaves >=2 grid steps (megacore); fall back to a single step."""
    for tg in (256, 128, 64, 32, 16, 8):
        if G % tg == 0 and G // tg >= 2:
            return tg
    return G


def tutte_layer_step(R, packed_in, prev9):
    """packed_in: [15, G, 128]; prev9: [9, G, 128] -> (out9 [9,G,128], total [9,G,128])."""
    _, G, L = packed_in.shape
    tg = _tile_groups(G)
    out_shapes = (jax.ShapeDtypeStruct((9, G, L), jnp.float32),
                  jax.ShapeDtypeStruct((9, G, L), jnp.float32))
    return pl.pallas_call(
        _tutte_layer_kernel,
        out_shape=out_shapes,
        grid=(G // tg,),
        in_specs=[pl.BlockSpec(memory_space=pltpu.MemorySpace.SMEM),
                  pl.BlockSpec((15, tg, L), lambda i: (0, i, 0)),
                  pl.BlockSpec((9, tg, L), lambda i: (0, i, 0))],
        out_specs=(pl.BlockSpec((9, tg, L), lambda i: (0, i, 0)),
                   pl.BlockSpec((9, tg, L), lambda i: (0, i, 0))),
        input_output_aliases={2: 1},   # prev distortion updated in place
        compiler_params=pltpu.CompilerParams(
            dimension_semantics=("parallel",),
            vmem_limit_bytes=48 * 1024 * 1024),
    )(R, packed_in, prev9)


# ----------------------------------------------------------------------------
# Mesh / lap_dict construction (synthetic regular grid mesh, as implied by
# TutteLayer.find_simplex index arithmetic)
# ----------------------------------------------------------------------------
def build_mesh(nres):
    interval = 1.0 / (nres - 1)
    verts = []
    for r in range(nres):
        for c in range(nres):
            verts.append((2.0 * (c * interval) - 1.0, 2.0 * (1.0 - r * interval) - 1.0))
    for r in range(nres - 1):
        for c in range(nres - 1):
            verts.append((2.0 * ((c + 0.5) * interval) - 1.0,
                          2.0 * (1.0 - (r + 0.5) * interval) - 1.0))
    verts = np.asarray(verts, np.float32)

    edges = []
    for r in range(nres):
        for c in range(nres - 1):
            edges.append((r * nres + c, r * nres + c + 1))
    for r in range(nres - 1):
        for c in range(nres):
            edges.append((r * nres + c, (r + 1) * nres + c))
    for r in range(nres - 1):
        for c in range(nres - 1):
            ctr = nres * nres + r * (nres - 1) + c
            for v in (r * nres + c, r * nres + c + 1,
                      (r + 1) * nres + c, (r + 1) * nres + c + 1):
                edges.append((ctr, v))
    edges = np.asarray(edges, np.int32).T  # [2, n_edges]

    bot = nres - 1
    bound = []
    for c in range(nres):
        bound.append(bot * nres + c)                 # bottom row
    for r in range(nres - 2, -1, -1):
        bound.append(r * nres + (nres - 1))          # right col
    for c in range(nres - 2, -1, -1):
        bound.append(c)                              # top row
    for r in range(1, nres - 1):
        bound.append(r * nres)                       # left col
    bound = np.asarray(bound, np.int32)

    n_vert = nres * nres + (nres - 1) ** 2
    bset = set(bound.tolist())
    interior = np.asarray([v for v in range(n_vert) if v not in bset], np.int32)
    return verts, edges, bound, interior


# ----------------------------------------------------------------------------
# Plain-JAX glue reproducing TutteLayer internals that feed the kernel
# ----------------------------------------------------------------------------
def find_simplex(points_xy, vertices, nres):
    """TutteLayer.find_simplex (grid-based). points_xy: [P,2] -> [P,3] int32."""
    p = points_xy / 2.0 + 0.5
    interval = 1.0 / (nres - 1)
    y_ids = jnp.floor(p[:, 0] / interval)
    x_ids = jnp.floor((1.0 - p[:, 1]) / interval)
    # TODO(synk): the torch reference assumes in-domain points; ids are clipped
    # here so padded / slightly out-of-domain points stay in-bounds.
    y_ids = jnp.clip(y_ids, 0, nres - 2).astype(jnp.int32)
    x_ids = jnp.clip(x_ids, 0, nres - 2).astype(jnp.int32)
    pc = jnp.clip(p, -0.95, 0.95)   # same clamp as the torch reference

    top_left = x_ids * nres + y_ids
    top_right = top_left + 1
    bottom_left = (x_ids + 1) * nres + y_ids
    bottom_right = bottom_left + 1
    center = x_ids * (nres - 1) + y_ids + nres * nres

    vnorm = vertices / 2.0 + 0.5
    cverts = vnorm[center]
    diff = pc - cverts
    tangent = diff[:, 1] / (diff[:, 0] + 1e-5)
    in_band = (tangent <= 1.0) & (tangent > -1.0)
    m1 = (diff[:, 0] >= 0) & in_band
    m2 = (diff[:, 1] >= 0) & (~in_band)
    m3 = (diff[:, 0] < 0) & in_band
    v1 = jnp.where(m1, top_right,
                   jnp.where(m2, top_left,
                             jnp.where(m3, bottom_left, bottom_right)))
    v2 = jnp.where(m1, bottom_right,
                   jnp.where(m2, top_right,
                             jnp.where(m3, top_left, bottom_left)))
    return jnp.stack([center, v1, v2], axis=-1).astype(jnp.int32)


def tutte_embedding(W_var, angle_var, edges, n_vert, bound_verts, interior_verts):
    """TutteLayer.tutte_embedding_sparse (batch=1), square boundary map.
    # TODO(synk): sparse batched Laplacian solve replaced by a dense f32 solve
    # (semantically equivalent for this small, parameter-sized mesh)."""
    W = jax.nn.sigmoid(W_var) * 0.6 + 0.2                    # [n_edges]
    ang = jax.nn.sigmoid(angle_var) * 0.6 + 0.2
    ang = ang / jnp.sum(ang)
    angle = jnp.cumsum(ang) * 2.0 * jnp.pi                   # [n_bound]

    pi = jnp.pi
    t = jnp.tan(angle)
    m1 = (angle > 7 * pi / 4) | (angle <= pi / 4)
    m2 = (angle > pi / 4) & (angle <= 3 * pi / 4)
    m3 = (angle > 3 * pi / 4) & (angle <= 5 * pi / 4)
    bx = jnp.where(m1, 1.0, jnp.where(m2, 1.0 / t, jnp.where(m3, -1.0, -1.0 / t)))
    by = jnp.where(m1, t, jnp.where(m2, 1.0, jnp.where(m3, -t, -1.0)))
    bound_pos = jnp.stack([bx, by], axis=-1)                 # [n_bound, 2]

    i, j = edges[0], edges[1]
    L = jnp.zeros((n_vert, n_vert), jnp.float32)
    L = L.at[i, j].add(-W).at[j, i].add(-W)
    L = L.at[i, i].add(W).at[j, j].add(W)
    L_ii = L[interior_verts][:, interior_verts]
    L_ib = L[interior_verts][:, bound_verts]
    b = -(L_ib @ bound_pos)
    x = jnp.linalg.solve(L_ii, b)

    out = jnp.zeros((n_vert, 2), jnp.float32)
    out = out.at[bound_verts].set(bound_pos.astype(jnp.float32))
    out = out.at[interior_verts].set(x.astype(jnp.float32))
    return out


# ----------------------------------------------------------------------------
# TutteVaryingNormal forward (whole thing jitted: per-layer pallas_call, gathers
# and the tiny Laplacian solve compile into one executable)
# ----------------------------------------------------------------------------
@functools.partial(jax.jit, static_argnames=("nres",))
def tutte_varying_normal_forward(input_points, normal_matrices, W_vars, angle_vars,
                                 vertices, edges, bound_verts, interior_verts, nres):
    B, N, _ = input_points.shape
    P = B * N
    n_vert = vertices.shape[0]
    num_layer = normal_matrices.shape[0]

    # pad points to a multiple of 1024 so G = P_pad/128 is a multiple of 8
    P_pad = ((P + 1023) // 1024) * 1024
    G = P_pad // LANE

    pts = input_points.reshape(P, 3).T.astype(jnp.float32)            # [3, P]
    if P_pad != P:
        pts = jnp.pad(pts, ((0, 0), (0, P_pad - P)))                   # [3, P_pad]
    prev_total = jnp.tile(jnp.eye(3, dtype=jnp.float32).reshape(9, 1),
                          (1, P_pad)).reshape(9, G, LANE)
    return_dict = {}
    new_points = None

    for i in range(num_layer):
        R = normal_matrices[i].astype(jnp.float32)                     # [3,3]
        rot = R @ pts                                                  # [3,P_pad] plain JAX
        cur_xy = rot[0:2].T                                            # [P_pad, 2]

        tri_nodes = find_simplex(cur_xy, vertices, nres)               # [P_pad, 3]
        new_vertices = tutte_embedding(W_vars[i], angle_vars[i], edges,
                                       n_vert, bound_verts, interior_verts)

        pA = vertices[tri_nodes[:, 0]]
        pB = vertices[tri_nodes[:, 1]]
        pC = vertices[tri_nodes[:, 2]]
        qA = new_vertices[tri_nodes[:, 0]]
        qB = new_vertices[tri_nodes[:, 1]]
        qC = new_vertices[tri_nodes[:, 2]]
        p6 = jnp.concatenate([pA, pB, pC], axis=1).T                   # [6, P_pad]
        q6 = jnp.concatenate([qA, qB, qC], axis=1).T                   # [6, P_pad]
        packed = jnp.concatenate([rot, p6, q6], axis=0).astype(jnp.float32)
        packed = packed.reshape(15, G, LANE)

        out9, prev_total = tutte_layer_step(R, packed, prev_total)     # Pallas

        out9 = out9.reshape(9, P_pad)
        pred = out9[0:2, :P]
        newp_full = out9[2:5]                                          # [3, P_pad]
        dist = out9[5:9, :P]
        pts = newp_full                                                # carry (padded)

        new_points = newp_full[:, :P].T.reshape(B, N, 3)
        return_dict[f"pred_points_{i}"] = new_points
        return_dict[f"new_vertices_{i}"] = new_vertices[None]          # [1, n_vert, 2]
        return_dict[f"pred_2d_points_{i}"] = pred.T.reshape(B, N, 2)
        return_dict[f"distortion{i + 1}"] = dist.T.reshape(P, 2, 2)

    total = prev_total.reshape(9, P_pad)[:, :P]
    return_dict["distortion"] = total.T.reshape(P, 3, 3)
    return new_points, return_dict


# ----------------------------------------------------------------------------
def _rot_z(a):
    c, s = np.cos(a), np.sin(a)
    return np.array([[c, -s, 0.0], [s, c, 0.0], [0.0, 0.0, 1.0]], np.float32)


def _rot_x(a):
    c, s = np.cos(a), np.sin(a)
    return np.array([[1.0, 0.0, 0.0], [0.0, c, -s], [0.0, s, c]], np.float32)


if __name__ == "__main__":
    NRES = 4                       # mesh_resolution
    NUM_LAYER = 2
    B, N = 1, 4096                 # TutteLayer assumes batch 1; P=4096 -> 2 parallel grid steps

    verts_np, edges_np, bound_np, interior_np = build_mesh(NRES)
    vertices = jnp.asarray(verts_np)
    edges = jnp.asarray(edges_np)
    bound_verts = jnp.asarray(bound_np)
    interior_verts = jnp.asarray(interior_np)
    n_edges = edges_np.shape[1]
    n_bound = bound_np.shape[0]

    # deterministic parameters (uniform [0,1) like torch.nn.init.uniform_)
    key = jax.random.PRNGKey(0)
    k_w, k_a, k_p = jax.random.split(key, 3)
    W_vars = jax.random.uniform(k_w, (NUM_LAYER, n_edges), dtype=jnp.float32)
    angle_vars = jax.random.uniform(k_a, (NUM_LAYER, n_bound), dtype=jnp.float32)
    normal_matrices = jnp.asarray(
        np.stack([_rot_z(0.3), _rot_x(0.2) @ _rot_z(-0.25)]), dtype=jnp.float32)

    input_points = jax.random.uniform(k_p, (B, N, 3), dtype=jnp.float32,
                                      minval=-0.4, maxval=0.4)

    new_points, out = tutte_varying_normal_forward(
        input_points, normal_matrices, W_vars, angle_vars,
        vertices, edges, bound_verts, interior_verts, nres=NRES)

    jax.block_until_ready(new_points)
    jax.block_until_ready(out["distortion"])
    assert new_points.shape == (B, N, 3)
    assert out["distortion"].shape == (B * N, 3, 3)
    assert out["pred_2d_points_0"].shape == (B, N, 2)
    assert out["distortion1"].shape == (B * N, 2, 2)
    assert bool(jnp.all(jnp.isfinite(new_points)))
    assert bool(jnp.all(jnp.isfinite(out["distortion"])))
    print("KERNEL_OK")
</pallas_src>

<mosaic_0001>
module attributes {stable_mosaic.version = 11 : i64} {
  func.func @_tutte_layer_kernel(%arg0: i32, %arg1: memref<3x3xf32, #tpu.memory_space<smem>>, %arg2: memref<15x16x128xf32, #tpu.memory_space<vmem>>, %arg3: memref<9x16x128xf32, #tpu.memory_space<vmem>>, %arg4: memref<9x16x128xf32, #tpu.memory_space<vmem>>, %arg5: memref<9x16x128xf32, #tpu.memory_space<vmem>>) attributes {dimension_semantics = [#tpu.dimension_semantics<parallel>], iteration_bounds = array<i64: 2>, scalar_prefetch = 0 : i64, scratch_operands = 0 : i64, tpu.core_type = #tpu.core_type<tc>, window_params = [{transform_indices = @transform_0, window_bounds = array<i64: 3, 3>}, {transform_indices = @transform_1, window_bounds = array<i64: 15, 16, 128>}, {transform_indices = @transform_2, window_bounds = array<i64: 9, 16, 128>}, {transform_indices = @transform_3, window_bounds = array<i64: 9, 16, 128>}, {transform_indices = @transform_4, window_bounds = array<i64: 9, 16, 128>}]} {
    %c0 = arith.constant 0 : index
    %c0_0 = arith.constant 0 : index
    %0 = memref.load %arg1[%c0, %c0_0] : memref<3x3xf32, #tpu.memory_space<smem>>
    %c0_1 = arith.constant 0 : index
    %c1 = arith.constant 1 : index
    %1 = memref.load %arg1[%c0_1, %c1] : memref<3x3xf32, #tpu.memory_space<smem>>
    %c0_2 = arith.constant 0 : index
    %c2 = arith.constant 2 : index
    %2 = memref.load %arg1[%c0_2, %c2] : memref<3x3xf32, #tpu.memory_space<smem>>
    %c1_3 = arith.constant 1 : index
    %c0_4 = arith.constant 0 : index
    %3 = memref.load %arg1[%c1_3, %c0_4] : memref<3x3xf32, #tpu.memory_space<smem>>
    %c1_5 = arith.constant 1 : index
    %c1_6 = arith.constant 1 : index
    %4 = memref.load %arg1[%c1_5, %c1_6] : memref<3x3xf32, #tpu.memory_space<smem>>
    %c1_7 = arith.constant 1 : index
    %c2_8 = arith.constant 2 : index
    %5 = memref.load %arg1[%c1_7, %c2_8] : memref<3x3xf32, #tpu.memory_space<smem>>
    %c2_9 = arith.constant 2 : index
    %c0_10 = arith.constant 0 : index
    %6 = memref.load %arg1[%c2_9, %c0_10] : memref<3x3xf32, #tpu.memory_space<smem>>
    %c2_11 = arith.constant 2 : index
    %c1_12 = arith.constant 1 : index
    %7 = memref.load %arg1[%c2_11, %c1_12] : memref<3x3xf32, #tpu.memory_space<smem>>
    %c2_13 = arith.constant 2 : index
    %c2_14 = arith.constant 2 : index
    %8 = memref.load %arg1[%c2_13, %c2_14] : memref<3x3xf32, #tpu.memory_space<smem>>
    %c0_15 = arith.constant 0 : index
    %c0_16 = arith.constant 0 : index
    %c0_17 = arith.constant 0 : index
    %9 = vector.load %arg2[%c0_15, %c0_16, %c0_17] : memref<15x16x128xf32, #tpu.memory_space<vmem>>, vector<1x16x128xf32>
    %10 = vector.shape_cast %9 : vector<1x16x128xf32> to vector<16x128xf32>
    %c1_18 = arith.constant 1 : index
    %c0_19 = arith.constant 0 : index
    %c0_20 = arith.constant 0 : index
    %11 = vector.load %arg2[%c1_18, %c0_19, %c0_20] : memref<15x16x128xf32, #tpu.memory_space<vmem>>, vector<1x16x128xf32>
    %12 = vector.shape_cast %11 : vector<1x16x128xf32> to vector<16x128xf32>
    %c2_21 = arith.constant 2 : index
    %c0_22 = arith.constant 0 : index
    %c0_23 = arith.constant 0 : index
    %13 = vector.load %arg2[%c2_21, %c0_22, %c0_23] : memref<15x16x128xf32, #tpu.memory_space<vmem>>, vector<1x16x128xf32>
    %14 = vector.shape_cast %13 : vector<1x16x128xf32> to vector<16x128xf32>
    %c3 = arith.constant 3 : index
    %c0_24 = arith.constant 0 : index
    %c0_25 = arith.constant 0 : index
    %15 = vector.load %arg2[%c3, %c0_24, %c0_25] : memref<15x16x128xf32, #tpu.memory_space<vmem>>, vector<1x16x128xf32>
    %16 = vector.shape_cast %15 : vector<1x16x128xf32> to vector<16x128xf32>
    %c4 = arith.constant 4 : index
    %c0_26 = arith.constant 0 : index
    %c0_27 = arith.constant 0 : index
    %17 = vector.load %arg2[%c4, %c0_26, %c0_27] : memref<15x16x128xf32, #tpu.memory_space<vmem>>, vector<1x16x128xf32>
    %18 = vector.shape_cast %17 : vector<1x16x128xf32> to vector<16x128xf32>
    %c5 = arith.constant 5 : index
    %c0_28 = arith.constant 0 : index
    %c0_29 = arith.constant 0 : index
    %19 = vector.load %arg2[%c5, %c0_28, %c0_29] : memref<15x16x128xf32, #tpu.memory_space<vmem>>, vector<1x16x128xf32>
    %20 = vector.shape_cast %19 : vector<1x16x128xf32> to vector<16x128xf32>
    %c6 = arith.constant 6 : index
    %c0_30 = arith.constant 0 : index
    %c0_31 = arith.constant 0 : index
    %21 = vector.load %arg2[%c6, %c0_30, %c0_31] : memref<15x16x128xf32, #tpu.memory_space<vmem>>, vector<1x16x128xf32>
    %22 = vector.shape_cast %21 : vector<1x16x128xf32> to vector<16x128xf32>
    %c7 = arith.constant 7 : index
    %c0_32 = arith.constant 0 : index
    %c0_33 = arith.constant 0 : index
    %23 = vector.load %arg2[%c7, %c0_32, %c0_33] : memref<15x16x128xf32, #tpu.memory_space<vmem>>, vector<1x16x128xf32>
    %24 = vector.shape_cast %23 : vector<1x16x128xf32> to vector<16x128xf32>
    %c8 = arith.constant 8 : index
    %c0_34 = arith.constant 0 : index
    %c0_35 = arith.constant 0 : index
    %25 = vector.load %arg2[%c8, %c0_34, %c0_35] : memref<15x16x128xf32, #tpu.memory_space<vmem>>, vector<1x16x128xf32>
    %26 = vector.shape_cast %25 : vector<1x16x128xf32> to vector<16x128xf32>
    %c9 = arith.constant 9 : index
    %c0_36 = arith.constant 0 : index
    %c0_37 = arith.constant 0 : index
    %27 = vector.load %arg2[%c9, %c0_36, %c0_37] : memref<15x16x128xf32, #tpu.memory_space<vmem>>, vector<1x16x128xf32>
    %28 = vector.shape_cast %27 : vector<1x16x128xf32> to vector<16x128xf32>
    %c10 = arith.constant 10 : index
    %c0_38 = arith.constant 0 : index
    %c0_39 = arith.constant 0 : index
    %29 = vector.load %arg2[%c10, %c0_38, %c0_39] : memref<15x16x128xf32, #tpu.memory_space<vmem>>, vector<1x16x128xf32>
    %30 = vector.shape_cast %29 : vector<1x16x128xf32> to vector<16x128xf32>
    %c11 = arith.constant 11 : index
    %c0_40 = arith.constant 0 : index
    %c0_41 = arith.constant 0 : index
    %31 = vector.load %arg2[%c11, %c0_40, %c0_41] : memref<15x16x128xf32, #tpu.memory_space<vmem>>, vector<1x16x128xf32>
    %32 = vector.shape_cast %31 : vector<1x16x128xf32> to vector<16x128xf32>
    %c12 = arith.constant 12 : index
    %c0_42 = arith.constant 0 : index
    %c0_43 = arith.constant 0 : index
    %33 = vector.load %arg2[%c12, %c0_42, %c0_43] : memref<15x16x128xf32, #tpu.memory_space<vmem>>, vector<1x16x128xf32>
    %34 = vector.shape_cast %33 : vector<1x16x128xf32> to vector<16x128xf32>
    %c13 = arith.constant 13 : index
    %c0_44 = arith.constant 0 : index
    %c0_45 = arith.constant 0 : index
    %35 = vector.load %arg2[%c13, %c0_44, %c0_45] : memref<15x16x128xf32, #tpu.memory_space<vmem>>, vector<1x16x128xf32>
    %36 = vector.shape_cast %35 : vector<1x16x128xf32> to vector<16x128xf32>
    %c14 = arith.constant 14 : index
    %c0_46 = arith.constant 0 : index
    %c0_47 = arith.constant 0 : index
    %37 = vector.load %arg2[%c14, %c0_46, %c0_47] : memref<15x16x128xf32, #tpu.memory_space<vmem>>, vector<1x16x128xf32>
    %38 = vector.shape_cast %37 : vector<1x16x128xf32> to vector<16x128xf32>
    %39 = arith.subf %10, %20 : vector<16x128xf32>
    %40 = arith.subf %12, %26 : vector<16x128xf32>
    %41 = arith.mulf %39, %40 : vector<16x128xf32>
    %42 = arith.subf %12, %22 : vector<16x128xf32>
    %43 = arith.subf %10, %24 : vector<16x128xf32>
    %44 = arith.mulf %42, %43 : vector<16x128xf32>
    %45 = arith.subf %41, %44 : vector<16x128xf32>
    %46 = math.absf %45 : vector<16x128xf32>
    %cst = arith.constant 5.000000e-01 : f32
    %47 = vector.broadcast %cst : f32 to vector<16x128xf32>
    %48 = arith.mulf %46, %47 : vector<16x128xf32>
    %49 = arith.subf %10, %16 : vector<16x128xf32>
    %50 = arith.subf %12, %26 : vector<16x128xf32>
    %51 = arith.mulf %49, %50 : vector<16x128xf32>
    %52 = arith.subf %12, %18 : vector<16x128xf32>
    %53 = arith.subf %10, %24 : vector<16x128xf32>
    %54 = arith.mulf %52, %53 : vector<16x128xf32>
    %55 = arith.subf %51, %54 : vector<16x128xf32>
    %56 = math.absf %55 : vector<16x128xf32>
    %cst_48 = arith.constant 5.000000e-01 : f32
    %57 = vector.broadcast %cst_48 : f32 to vector<16x128xf32>
    %58 = arith.mulf %56, %57 : vector<16x128xf32>
    %59 = arith.subf %10, %16 : vector<16x128xf32>
    %60 = arith.subf %12, %22 : vector<16x128xf32>
    %61 = arith.mulf %59, %60 : vector<16x128xf32>
    %62 = arith.subf %12, %18 : vector<16x128xf32>
    %63 = arith.subf %10, %20 : vector<16x128xf32>
    %64 = arith.mulf %62, %63 : vector<16x128xf32>
    %65 = arith.subf %61, %64 : vector<16x128xf32>
    %66 = math.absf %65 : vector<16x128xf32>
    %cst_49 = arith.constant 5.000000e-01 : f32
    %67 = vector.broadcast %cst_49 : f32 to vector<16x128xf32>
    %68 = arith.mulf %66, %67 : vector<16x128xf32>
    %69 = arith.addf %48, %58 : vector<16x128xf32>
    %70 = arith.addf %69, %68 : vector<16x128xf32>
    %71 = tpu.reciprocal %70 {approx = true} : vector<16x128xf32> -> vector<16x128xf32>
    %72 = arith.mulf %28, %48 : vector<16x128xf32>
    %73 = arith.mulf %32, %58 : vector<16x128xf32>
    %74 = arith.addf %72, %73 : vector<16x128xf32>
    %75 = arith.mulf %36, %68 : vector<16x128xf32>
    %76 = arith.addf %74, %75 : vector<16x128xf32>
    %77 = arith.mulf %76, %71 : vector<16x128xf32>
    %78 = arith.mulf %30, %48 : vector<16x128xf32>
    %79 = arith.mulf %34, %58 : vector<16x128xf32>
    %80 = arith.addf %78, %79 : vector<16x128xf32>
    %81 = arith.mulf %38, %68 : vector<16x128xf32>
    %82 = arith.addf %80, %81 : vector<16x128xf32>
    %83 = arith.mulf %82, %71 : vector<16x128xf32>
    %c0_50 = arith.constant 0 : index
    %c0_51 = arith.constant 0 : index
    %c0_52 = arith.constant 0 : index
    %84 = vector.load %arg4[%c0_50, %c0_51, %c0_52] : memref<9x16x128xf32, #tpu.memory_space<vmem>>, vector<1x16x128xf32>
    %85 = vector.shape_cast %84 : vector<1x16x128xf32> to vector<16x128xf32>
    %86 = vector.shape_cast %77 : vector<16x128xf32> to vector<1x16x128xf32>
    tpu.vector_store %arg4[%c0_50, %c0_51, %c0_52], %86 {strides = array<i32>} : memref<9x16x128xf32, #tpu.memory_space<vmem>>, vector<1x16x128xf32>,
    %c1_53 = arith.constant 1 : index
    %c0_54 = arith.constant 0 : index
    %c0_55 = arith.constant 0 : index
    %87 = vector.load %arg4[%c1_53, %c0_54, %c0_55] : memref<9x16x128xf32, #tpu.memory_space<vmem>>, vector<1x16x128xf32>
    %88 = vector.shape_cast %87 : vector<1x16x128xf32> to vector<16x128xf32>
    %89 = vector.shape_cast %83 : vector<16x128xf32> to vector<1x16x128xf32>
    tpu.vector_store %arg4[%c1_53, %c0_54, %c0_55], %89 {strides = array<i32>} : memref<9x16x128xf32, #tpu.memory_space<vmem>>, vector<1x16x128xf32>,
    %90 = vector.broadcast %0 : f32 to vector<16x128xf32>
    %91 = arith.mulf %90, %77 : vector<16x128xf32>
    %92 = vector.broadcast %3 : f32 to vector<16x128xf32>
    %93 = arith.mulf %92, %83 : vector<16x128xf32>
    %94 = arith.addf %91, %93 : vector<16x128xf32>
    %95 = vector.broadcast %6 : f32 to vector<16x128xf32>
    %96 = arith.mulf %95, %14 : vector<16x128xf32>
    %97 = arith.addf %94, %96 : vector<16x128xf32>
    %c2_56 = arith.constant 2 : index
    %c0_57 = arith.constant 0 : index
    %c0_58 = arith.constant 0 : index
    %98 = vector.load %arg4[%c2_56, %c0_57, %c0_58] : memref<9x16x128xf32, #tpu.memory_space<vmem>>, vector<1x16x128xf32>
    %99 = vector.shape_cast %98 : vector<1x16x128xf32> to vector<16x128xf32>
    %100 = vector.shape_cast %97 : vector<16x128xf32> to vector<1x16x128xf32>
    tpu.vector_store %arg4[%c2_56, %c0_57, %c0_58], %100 {strides = array<i32>} : memref<9x16x128xf32, #tpu.memory_space<vmem>>, vector<1x16x128xf32>,
    %101 = vector.broadcast %1 : f32 to vector<16x128xf32>
    %102 = arith.mulf %101, %77 : vector<16x128xf32>
    %103 = vector.broadcast %4 : f32 to vector<16x128xf32>
    %104 = arith.mulf %103, %83 : vector<16x128xf32>
    %105 = arith.addf %102, %104 : vector<16x128xf32>
    %106 = vector.broadcast %7 : f32 to vector<16x128xf32>
    %107 = arith.mulf %106, %14 : vector<16x128xf32>
    %108 = arith.addf %105, %107 : vector<16x128xf32>
    %c3_59 = arith.constant 3 : index
    %c0_60 = arith.constant 0 : index
    %c0_61 = arith.constant 0 : index
    %109 = vector.load %arg4[%c3_59, %c0_60, %c0_61] : memref<9x16x128xf32, #tpu.memory_space<vmem>>, vector<1x16x128xf32>
    %110 = vector.shape_cast %109 : vector<1x16x128xf32> to vector<16x128xf32>
    %111 = vector.shape_cast %108 : vector<16x128xf32> to vector<1x16x128xf32>
    tpu.vector_store %arg4[%c3_59, %c0_60, %c0_61], %111 {strides = array<i32>} : memref<9x16x128xf32, #tpu.memory_space<vmem>>, vector<1x16x128xf32>,
    %112 = vector.broadcast %2 : f32 to vector<16x128xf32>
    %113 = arith.mulf %112, %77 : vector<16x128xf32>
    %114 = vector.broadcast %5 : f32 to vector<16x128xf32>
    %115 = arith.mulf %114, %83 : vector<16x128xf32>
    %116 = arith.addf %113, %115 : vector<16x128xf32>
    %117 = vector.broadcast %8 : f32 to vector<16x128xf32>
    %118 = arith.mulf %117, %14 : vector<16x128xf32>
    %119 = arith.addf %116, %118 : vector<16x128xf32>
    %c4_62 = arith.constant 4 : index
    %c0_63 = arith.constant 0 : index
    %c0_64 = arith.constant 0 : index
    %120 = vector.load %arg4[%c4_62, %c0_63, %c0_64] : memref<9x16x128xf32, #tpu.memory_space<vmem>>, vector<1x16x128xf32>
    %121 = vector.shape_cast %120 : vector<1x16x128xf32> to vector<16x128xf32>
    %122 = vector.shape_cast %119 : vector<16x128xf32> to vector<1x16x128xf32>
    tpu.vector_store %arg4[%c4_62, %c0_63, %c0_64], %122 {strides = array<i32>} : memref<9x16x128xf32, #tpu.memory_space<vmem>>, vector<1x16x128xf32>,
    %123 = arith.subf %20, %16 : vector<16x128xf32>
    %124 = arith.subf %22, %18 : vector<16x128xf32>
    %125 = arith.subf %24, %16 : vector<16x128xf32>
    %126 = arith.subf %26, %18 : vector<16x128xf32>
    %127 = arith.subf %32, %28 : vector<16x128xf32>
    %128 = arith.subf %34, %30 : vector<16x128xf32>
    %129 = arith.subf %36, %28 : vector<16x128xf32>
    %130 = arith.subf %38, %30 : vector<16x128xf32>
    %131 = arith.mulf %123, %126 : vector<16x128xf32>
    %132 = arith.mulf %125, %124 : vector<16x128xf32>
    %133 = arith.subf %131, %132 : vector<16x128xf32>
    %134 = tpu.reciprocal %133 {approx = true} : vector<16x128xf32> -> vector<16x128xf32>
    %135 = arith.mulf %127, %126 : vector<16x128xf32>
    %136 = arith.mulf %129, %124 : vector<16x128xf32>
    %137 = arith.subf %135, %136 : vector<16x128xf32>
    %138 = arith.mulf %137, %134 : vector<16x128xf32>
    %139 = arith.mulf %129, %123 : vector<16x128xf32>
    %140 = arith.mulf %127, %125 : vector<16x128xf32>
    %141 = arith.subf %139, %140 : vector<16x128xf32>
    %142 = arith.mulf %141, %134 : vector<16x128xf32>
    %143 = arith.mulf %128, %126 : vector<16x128xf32>
    %144 = arith.mulf %130, %124 : vector<16x128xf32>
    %145 = arith.subf %143, %144 : vector<16x128xf32>
    %146 = arith.mulf %145, %134 : vector<16x128xf32>
    %147 = arith.mulf %130, %123 : vector<16x128xf32>
    %148 = arith.mulf %128, %125 : vector<16x128xf32>
    %149 = arith.subf %147, %148 : vector<16x128xf32>
    %150 = arith.mulf %149, %134 : vector<16x128xf32>
    %c5_65 = arith.constant 5 : index
    %c0_66 = arith.constant 0 : index
    %c0_67 = arith.constant 0 : index
    %151 = vector.load %arg4[%c5_65, %c0_66, %c0_67] : memref<9x16x128xf32, #tpu.memory_space<vmem>>, vector<1x16x128xf32>
    %152 = vector.shape_cast %151 : vector<1x16x128xf32> to vector<16x128xf32>
    %153 = vector.shape_cast %138 : vector<16x128xf32> to vector<1x16x128xf32>
    tpu.vector_store %arg4[%c5_65, %c0_66, %c0_67], %153 {strides = array<i32>} : memref<9x16x128xf32, #tpu.memory_space<vmem>>, vector<1x16x128xf32>,
    %c6_68 = arith.constant 6 : index
    %c0_69 = arith.constant 0 : index
    %c0_70 = arith.constant 0 : index
    %154 = vector.load %arg4[%c6_68, %c0_69, %c0_70] : memref<9x16x128xf32, #tpu.memory_space<vmem>>, vector<1x16x128xf32>
    %155 = vector.shape_cast %154 : vector<1x16x128xf32> to vector<16x128xf32>
    %156 = vector.shape_cast %142 : vector<16x128xf32> to vector<1x16x128xf32>
    tpu.vector_store %arg4[%c6_68, %c0_69, %c0_70], %156 {strides = array<i32>} : memref<9x16x128xf32, #tpu.memory_space<vmem>>, vector<1x16x128xf32>,
    %c7_71 = arith.constant 7 : index
    %c0_72 = arith.constant 0 : index
    %c0_73 = arith.constant 0 : index
    %157 = vector.load %arg4[%c7_71, %c0_72, %c0_73] : memref<9x16x128xf32, #tpu.memory_space<vmem>>, vector<1x16x128xf32>
    %158 = vector.shape_cast %157 : vector<1x16x128xf32> to vector<16x128xf32>
    %159 = vector.shape_cast %146 : vector<16x128xf32> to vector<1x16x128xf32>
    tpu.vector_store %arg4[%c7_71, %c0_72, %c0_73], %159 {strides = array<i32>} : memref<9x16x128xf32, #tpu.memory_space<vmem>>, vector<1x16x128xf32>,
    %c8_74 = arith.constant 8 : index
    %c0_75 = arith.constant 0 : index
    %c0_76 = arith.constant 0 : index
    %160 = vector.load %arg4[%c8_74, %c0_75, %c0_76] : memref<9x16x128xf32, #tpu.memory_space<vmem>>, vector<1x16x128xf32>
    %161 = vector.shape_cast %160 : vector<1x16x128xf32> to vector<16x128xf32>
    %162 = vector.shape_cast %150 : vector<16x128xf32> to vector<1x16x128xf32>
    tpu.vector_store %arg4[%c8_74, %c0_75, %c0_76], %162 {strides = array<i32>} : memref<9x16x128xf32, #tpu.memory_space<vmem>>, vector<1x16x128xf32>,
    %163 = vector.broadcast %0 : f32 to vector<16x128xf32>
    %164 = arith.mulf %138, %163 : vector<16x128xf32>
    %165 = vector.broadcast %3 : f32 to vector<16x128xf32>
    %166 = arith.mulf %142, %165 : vector<16x128xf32>
    %167 = arith.addf %164, %166 : vector<16x128xf32>
    %168 = vector.broadcast %1 : f32 to vector<16x128xf32>
    %169 = arith.mulf %138, %168 : vector<16x128xf32>
    %170 = vector.broadcast %4 : f32 to vector<16x128xf32>
    %171 = arith.mulf %142, %170 : vector<16x128xf32>
    %172 = arith.addf %169, %171 : vector<16x128xf32>
    %173 = vector.broadcast %2 : f32 to vector<16x128xf32>
    %174 = arith.mulf %138, %173 : vector<16x128xf32>
    %175 = vector.broadcast %5 : f32 to vector<16x128xf32>
    %176 = arith.mulf %142, %175 : vector<16x128xf32>
    %177 = arith.addf %174, %176 : vector<16x128xf32>
    %178 = vector.broadcast %0 : f32 to vector<16x128xf32>
    %179 = arith.mulf %146, %178 : vector<16x128xf32>
    %180 = vector.broadcast %3 : f32 to vector<16x128xf32>
    %181 = arith.mulf %150, %180 : vector<16x128xf32>
    %182 = arith.addf %179, %181 : vector<16x128xf32>
    %183 = vector.broadcast %1 : f32 to vector<16x128xf32>
    %184 = arith.mulf %146, %183 : vector<16x128xf32>
    %185 = vector.broadcast %4 : f32 to vector<16x128xf32>
    %186 = arith.mulf %150, %185 : vector<16x128xf32>
    %187 = arith.addf %184, %186 : vector<16x128xf32>
    %188 = vector.broadcast %2 : f32 to vector<16x128xf32>
    %189 = arith.mulf %146, %188 : vector<16x128xf32>
    %190 = vector.broadcast %5 : f32 to vector<16x128xf32>
    %191 = arith.mulf %150, %190 : vector<16x128xf32>
    %192 = arith.addf %189, %191 : vector<16x128xf32>
    %193 = vector.broadcast %0 : f32 to vector<16x128xf32>
    %194 = arith.mulf %193, %167 : vector<16x128xf32>
    %195 = vector.broadcast %3 : f32 to vector<16x128xf32>
    %196 = arith.mulf %195, %182 : vector<16x128xf32>
    %197 = arith.addf %194, %196 : vector<16x128xf32>
    %198 = arith.mulf %6, %6 : f32
    %199 = vector.broadcast %198 : f32 to vector<16x128xf32>
    %200 = arith.addf %197, %199 : vector<16x128xf32>
    %201 = vector.broadcast %0 : f32 to vector<16x128xf32>
    %202 = arith.mulf %201, %172 : vector<16x128xf32>
    %203 = vector.broadcast %3 : f32 to vector<16x128xf32>
    %204 = arith.mulf %203, %187 : vector<16x128xf32>
    %205 = arith.addf %202, %204 : vector<16x128xf32>
    %206 = arith.mulf %6, %7 : f32
    %207 = vector.broadcast %206 : f32 to vector<16x128xf32>
    %208 = arith.addf %205, %207 : vector<16x128xf32>
    %209 = vector.broadcast %0 : f32 to vector<16x128xf32>
    %210 = arith.mulf %209, %177 : vector<16x128xf32>
    %211 = vector.broadcast %3 : f32 to vector<16x128xf32>
    %212 = arith.mulf %211, %192 : vector<16x128xf32>
    %213 = arith.addf %210, %212 : vector<16x128xf32>
    %214 = arith.mulf %6, %8 : f32
    %215 = vector.broadcast %214 : f32 to vector<16x128xf32>
    %216 = arith.addf %213, %215 : vector<16x128xf32>
    %217 = vector.broadcast %1 : f32 to vector<16x128xf32>
    %218 = arith.mulf %217, %167 : vector<16x128xf32>
    %219 = vector.broadcast %4 : f32 to vector<16x128xf32>
    %220 = arith.mulf %219, %182 : vector<16x128xf32>
    %221 = arith.addf %218, %220 : vector<16x128xf32>
    %222 = arith.mulf %7, %6 : f32
    %223 = vector.broadcast %222 : f32 to vector<16x128xf32>
    %224 = arith.addf %221, %223 : vector<16x128xf32>
    %225 = vector.broadcast %1 : f32 to vector<16x128xf32>
    %226 = arith.mulf %225, %172 : vector<16x128xf32>
    %227 = vector.broadcast %4 : f32 to vector<16x128xf32>
    %228 = arith.mulf %227, %187 : vector<16x128xf32>
    %229 = arith.addf %226, %228 : vector<16x128xf32>
    %230 = arith.mulf %7, %7 : f32
    %231 = vector.broadcast %230 : f32 to vector<16x128xf32>
    %232 = arith.addf %229, %231 : vector<16x128xf32>
    %233 = vector.broadcast %1 : f32 to vector<16x128xf32>
    %234 = arith.mulf %233, %177 : vector<16x128xf32>
    %235 = vector.broadcast %4 : f32 to vector<16x128xf32>
    %236 = arith.mulf %235, %192 : vector<16x128xf32>
    %237 = arith.addf %234, %236 : vector<16x128xf32>
    %238 = arith.mulf %7, %8 : f32
    %239 = vector.broadcast %238 : f32 to vector<16x128xf32>
    %240 = arith.addf %237, %239 : vector<16x128xf32>
    %241 = vector.broadcast %2 : f32 to vector<16x128xf32>
    %242 = arith.mulf %241, %167 : vector<16x128xf32>
    %243 = vector.broadcast %5 : f32 to vector<16x128xf32>
    %244 = arith.mulf %243, %182 : vector<16x128xf32>
    %245 = arith.addf %242, %244 : vector<16x128xf32>
    %246 = arith.mulf %8, %6 : f32
    %247 = vector.broadcast %246 : f32 to vector<16x128xf32>
    %248 = arith.addf %245, %247 : vector<16x128xf32>
    %249 = vector.broadcast %2 : f32 to vector<16x128xf32>
    %250 = arith.mulf %249, %172 : vector<16x128xf32>
    %251 = vector.broadcast %5 : f32 to vector<16x128xf32>
    %252 = arith.mulf %251, %187 : vector<16x128xf32>
    %253 = arith.addf %250, %252 : vector<16x128xf32>
    %254 = arith.mulf %8, %7 : f32
    %255 = vector.broadcast %254 : f32 to vector<16x128xf32>
    %256 = arith.addf %253, %255 : vector<16x128xf32>
    %257 = vector.broadcast %2 : f32 to vector<16x128xf32>
    %258 = arith.mulf %257, %177 : vector<16x128xf32>
    %259 = vector.broadcast %5 : f32 to vector<16x128xf32>
    %260 = arith.mulf %259, %192 : vector<16x128xf32>
    %261 = arith.addf %258, %260 : vector<16x128xf32>
    %262 = arith.mulf %8, %8 : f32
    %263 = vector.broadcast %262 : f32 to vector<16x128xf32>
    %264 = arith.addf %261, %263 : vector<16x128xf32>
    %c0_77 = arith.constant 0 : index
    %c0_78 = arith.constant 0 : index
    %c0_79 = arith.constant 0 : index
    %265 = vector.load %arg3[%c0_77, %c0_78, %c0_79] : memref<9x16x128xf32, #tpu.memory_space<vmem>>, vector<1x16x128xf32>
    %266 = vector.shape_cast %265 : vector<1x16x128xf32> to vector<16x128xf32>
    %c1_80 = arith.constant 1 : index
    %c0_81 = arith.constant 0 : index
    %c0_82 = arith.constant 0 : index
    %267 = vector.load %arg3[%c1_80, %c0_81, %c0_82] : memref<9x16x128xf32, #tpu.memory_space<vmem>>, vector<1x16x128xf32>
    %268 = vector.shape_cast %267 : vector<1x16x128xf32> to vector<16x128xf32>
    %c2_83 = arith.constant 2 : index
    %c0_84 = arith.constant 0 : index
    %c0_85 = arith.constant 0 : index
    %269 = vector.load %arg3[%c2_83, %c0_84, %c0_85] : memref<9x16x128xf32, #tpu.memory_space<vmem>>, vector<1x16x128xf32>
    %270 = vector.shape_cast %269 : vector<1x16x128xf32> to vector<16x128xf32>
    %c3_86 = arith.constant 3 : index
    %c0_87 = arith.constant 0 : index
    %c0_88 = arith.constant 0 : index
    %271 = vector.load %arg3[%c3_86, %c0_87, %c0_88] : memref<9x16x128xf32, #tpu.memory_space<vmem>>, vector<1x16x128xf32>
    %272 = vector.shape_cast %271 : vector<1x16x128xf32> to vector<16x128xf32>
    %c4_89 = arith.constant 4 : index
    %c0_90 = arith.constant 0 : index
    %c0_91 = arith.constant 0 : index
    %273 = vector.load %arg3[%c4_89, %c0_90, %c0_91] : memref<9x16x128xf32, #tpu.memory_space<vmem>>, vector<1x16x128xf32>
    %274 = vector.shape_cast %273 : vector<1x16x128xf32> to vector<16x128xf32>
    %c5_92 = arith.constant 5 : index
    %c0_93 = arith.constant 0 : index
    %c0_94 = arith.constant 0 : index
    %275 = vector.load %arg3[%c5_92, %c0_93, %c0_94] : memref<9x16x128xf32, #tpu.memory_space<vmem>>, vector<1x16x128xf32>
    %276 = vector.shape_cast %275 : vector<1x16x128xf32> to vector<16x128xf32>
    %c6_95 = arith.constant 6 : index
    %c0_96 = arith.constant 0 : index
    %c0_97 = arith.constant 0 : index
    %277 = vector.load %arg3[%c6_95, %c0_96, %c0_97] : memref<9x16x128xf32, #tpu.memory_space<vmem>>, vector<1x16x128xf32>
    %278 = vector.shape_cast %277 : vector<1x16x128xf32> to vector<16x128xf32>
    %c7_98 = arith.constant 7 : index
    %c0_99 = arith.constant 0 : index
    %c0_100 = arith.constant 0 : index
    %279 = vector.load %arg3[%c7_98, %c0_99, %c0_100] : memref<9x16x128xf32, #tpu.memory_space<vmem>>, vector<1x16x128xf32>
    %280 = vector.shape_cast %279 : vector<1x16x128xf32> to vector<16x128xf32>
    %c8_101 = arith.constant 8 : index
    %c0_102 = arith.constant 0 : index
    %c0_103 = arith.constant 0 : index
    %281 = vector.load %arg3[%c8_101, %c0_102, %c0_103] : memref<9x16x128xf32, #tpu.memory_space<vmem>>, vector<1x16x128xf32>
    %282 = vector.shape_cast %281 : vector<1x16x128xf32> to vector<16x128xf32>
    %283 = arith.mulf %200, %266 : vector<16x128xf32>
    %284 = arith.mulf %208, %272 : vector<16x128xf32>
    %285 = arith.addf %283, %284 : vector<16x128xf32>
    %286 = arith.mulf %216, %278 : vector<16x128xf32>
    %287 = arith.addf %285, %286 : vector<16x128xf32>
    %c0_104 = arith.constant 0 : index
    %c0_105 = arith.constant 0 : index
    %c0_106 = arith.constant 0 : index
    %288 = vector.load %arg5[%c0_104, %c0_105, %c0_106] : memref<9x16x128xf32, #tpu.memory_space<vmem>>, vector<1x16x128xf32>
    %289 = vector.shape_cast %288 : vector<1x16x128xf32> to vector<16x128xf32>
    %290 = vector.shape_cast %287 : vector<16x128xf32> to vector<1x16x128xf32>
    tpu.vector_store %arg5[%c0_104, %c0_105, %c0_106], %290 {strides = array<i32>} : memref<9x16x128xf32, #tpu.memory_space<vmem>>, vector<1x16x128xf32>,
    %291 = arith.mulf %200, %268 : vector<16x128xf32>
    %292 = arith.mulf %208, %274 : vector<16x128xf32>
    %293 = arith.addf %291, %292 : vector<16x128xf32>
    %294 = arith.mulf %216, %280 : vector<16x128xf32>
    %295 = arith.addf %293, %294 : vector<16x128xf32>
    %c1_107 = arith.constant 1 : index
    %c0_108 = arith.constant 0 : index
    %c0_109 = arith.constant 0 : index
    %296 = vector.load %arg5[%c1_107, %c0_108, %c0_109] : memref<9x16x128xf32, #tpu.memory_space<vmem>>, vector<1x16x128xf32>
    %297 = vector.shape_cast %296 : vector<1x16x128xf32> to vector<16x128xf32>
    %298 = vector.shape_cast %295 : vector<16x128xf32> to vector<1x16x128xf32>
    tpu.vector_store %arg5[%c1_107, %c0_108, %c0_109], %298 {strides = array<i32>} : memref<9x16x128xf32, #tpu.memory_space<vmem>>, vector<1x16x128xf32>,
    %299 = arith.mulf %200, %270 : vector<16x128xf32>
    %300 = arith.mulf %208, %276 : vector<16x128xf32>
    %301 = arith.addf %299, %300 : vector<16x128xf32>
    %302 = arith.mulf %216, %282 : vector<16x128xf32>
    %303 = arith.addf %301, %302 : vector<16x128xf32>
    %c2_110 = arith.constant 2 : index
    %c0_111 = arith.constant 0 : index
    %c0_112 = arith.constant 0 : index
    %304 = vector.load %arg5[%c2_110, %c0_111, %c0_112] : memref<9x16x128xf32, #tpu.memory_space<vmem>>, vector<1x16x128xf32>
    %305 = vector.shape_cast %304 : vector<1x16x128xf32> to vector<16x128xf32>
    %306 = vector.shape_cast %303 : vector<16x128xf32> to vector<1x16x128xf32>
    tpu.vector_store %arg5[%c2_110, %c0_111, %c0_112], %306 {strides = array<i32>} : memref<9x16x128xf32, #tpu.memory_space<vmem>>, vector<1x16x128xf32>,
    %307 = arith.mulf %224, %266 : vector<16x128xf32>
    %308 = arith.mulf %232, %272 : vector<16x128xf32>
    %309 = arith.addf %307, %308 : vector<16x128xf32>
    %310 = arith.mulf %240, %278 : vector<16x128xf32>
    %311 = arith.addf %309, %310 : vector<16x128xf32>
    %c3_113 = arith.constant 3 : index
    %c0_114 = arith.constant 0 : index
    %c0_115 = arith.constant 0 : index
    %312 = vector.load %arg5[%c3_113, %c0_114, %c0_115] : memref<9x16x128xf32, #tpu.memory_space<vmem>>, vector<1x16x128xf32>
    %313 = vector.shape_cast %312 : vector<1x16x128xf32> to vector<16x128xf32>
    %314 = vector.shape_cast %311 : vector<16x128xf32> to vector<1x16x128xf32>
    tpu.vector_store %arg5[%c3_113, %c0_114, %c0_115], %314 {strides = array<i32>} : memref<9x16x128xf32, #tpu.memory_space<vmem>>, vector<1x16x128xf32>,
    %315 = arith.mulf %224, %268 : vector<16x128xf32>
    %316 = arith.mulf %232, %274 : vector<16x128xf32>
    %317 = arith.addf %315, %316 : vector<16x128xf32>
    %318 = arith.mulf %240, %280 : vector<16x128xf32>
    %319 = arith.addf %317, %318 : vector<16x128xf32>
    %c4_116 = arith.constant 4 : index
    %c0_117 = arith.constant 0 : index
    %c0_118 = arith.constant 0 : index
    %320 = vector.load %arg5[%c4_116, %c0_117, %c0_118] : memref<9x16x128xf32, #tpu.memory_space<vmem>>, vector<1x16x128xf32>
    %321 = vector.shape_cast %320 : vector<1x16x128xf32> to vector<16x128xf32>
    %322 = vector.shape_cast %319 : vector<16x128xf32> to vector<1x16x128xf32>
    tpu.vector_store %arg5[%c4_116, %c0_117, %c0_118], %322 {strides = array<i32>} : memref<9x16x128xf32, #tpu.memory_space<vmem>>, vector<1x16x128xf32>,
    %323 = arith.mulf %224, %270 : vector<16x128xf32>
    %324 = arith.mulf %232, %276 : vector<16x128xf32>
    %325 = arith.addf %323, %324 : vector<16x128xf32>
    %326 = arith.mulf %240, %282 : vector<16x128xf32>
    %327 = arith.addf %325, %326 : vector<16x128xf32>
    %c5_119 = arith.constant 5 : index
    %c0_120 = arith.constant 0 : index
    %c0_121 = arith.constant 0 : index
    %328 = vector.load %arg5[%c5_119, %c0_120, %c0_121] : memref<9x16x128xf32, #tpu.memory_space<vmem>>, vector<1x16x128xf32>
    %329 = vector.shape_cast %328 : vector<1x16x128xf32> to vector<16x128xf32>
    %330 = vector.shape_cast %327 : vector<16x128xf32> to vector<1x16x128xf32>
    tpu.vector_store %arg5[%c5_119, %c0_120, %c0_121], %330 {strides = array<i32>} : memref<9x16x128xf32, #tpu.memory_space<vmem>>, vector<1x16x128xf32>,
    %331 = arith.mulf %248, %266 : vector<16x128xf32>
    %332 = arith.mulf %256, %272 : vector<16x128xf32>
    %333 = arith.addf %331, %332 : vector<16x128xf32>
    %334 = arith.mulf %264, %278 : vector<16x128xf32>
    %335 = arith.addf %333, %334 : vector<16x128xf32>
    %c6_122 = arith.constant 6 : index
    %c0_123 = arith.constant 0 : index
    %c0_124 = arith.constant 0 : index
    %336 = vector.load %arg5[%c6_122, %c0_123, %c0_124] : memref<9x16x128xf32, #tpu.memory_space<vmem>>, vector<1x16x128xf32>
    %337 = vector.shape_cast %336 : vector<1x16x128xf32> to vector<16x128xf32>
    %338 = vector.shape_cast %335 : vector<16x128xf32> to vector<1x16x128xf32>
    tpu.vector_store %arg5[%c6_122, %c0_123, %c0_124], %338 {strides = array<i32>} : memref<9x16x128xf32, #tpu.memory_space<vmem>>, vector<1x16x128xf32>,
    %339 = arith.mulf %248, %268 : vector<16x128xf32>
    %340 = arith.mulf %256, %274 : vector<16x128xf32>
    %341 = arith.addf %339, %340 : vector<16x128xf32>
    %342 = arith.mulf %264, %280 : vector<16x128xf32>
    %343 = arith.addf %341, %342 : vector<16x128xf32>
    %c7_125 = arith.constant 7 : index
    %c0_126 = arith.constant 0 : index
    %c0_127 = arith.constant 0 : index
    %344 = vector.load %arg5[%c7_125, %c0_126, %c0_127] : memref<9x16x128xf32, #tpu.memory_space<vmem>>, vector<1x16x128xf32>
    %345 = vector.shape_cast %344 : vector<1x16x128xf32> to vector<16x128xf32>
    %346 = vector.shape_cast %343 : vector<16x128xf32> to vector<1x16x128xf32>
    tpu.vector_store %arg5[%c7_125, %c0_126, %c0_127], %346 {strides = array<i32>} : memref<9x16x128xf32, #tpu.memory_space<vmem>>, vector<1x16x128xf32>,
    %347 = arith.mulf %248, %270 : vector<16x128xf32>
    %348 = arith.mulf %256, %276 : vector<16x128xf32>
    %349 = arith.addf %347, %348 : vector<16x128xf32>
    %350 = arith.mulf %264, %282 : vector<16x128xf32>
    %351 = arith.addf %349, %350 : vector<16x128xf32>
    %c8_128 = arith.constant 8 : index
    %c0_129 = arith.constant 0 : index
    %c0_130 = arith.constant 0 : index
    %352 = vector.load %arg5[%c8_128, %c0_129, %c0_130] : memref<9x16x128xf32, #tpu.memory_space<vmem>>, vector<1x16x128xf32>
    %353 = vector.shape_cast %352 : vector<1x16x128xf32> to vector<16x128xf32>
    %354 = vector.shape_cast %351 : vector<16x128xf32> to vector<1x16x128xf32>
    tpu.vector_store %arg5[%c8_128, %c0_129, %c0_130], %354 {strides = array<i32>} : memref<9x16x128xf32, #tpu.memory_space<vmem>>, vector<1x16x128xf32>,
    return
  }
  func.func @transform_0(%arg0: i32) -> (i32, i32) {
    %c0_i32 = arith.constant 0 : i32
    %c0_i32_0 = arith.constant 0 : i32
    %c0_i32_1 = arith.constant 0 : i32
    return %c0_i32, %c0_i32_0 : i32, i32
  }
  func.func @transform_1(%arg0: i32) -> (i32, i32, i32) {
    %c0_i32 = arith.constant 0 : i32
    %c0_i32_0 = arith.constant 0 : i32
    %c0_i32_1 = arith.constant 0 : i32
    return %c0_i32, %arg0, %c0_i32_0 : i32, i32, i32
  }
  func.func @transform_2(%arg0: i32) -> (i32, i32, i32) {
    %c0_i32 = arith.constant 0 : i32
    %c0_i32_0 = arith.constant 0 : i32
    %c0_i32_1 = arith.constant 0 : i32
    return %c0_i32, %arg0, %c0_i32_0 : i32, i32, i32
  }
  func.func @transform_3(%arg0: i32) -> (i32, i32, i32) {
    %c0_i32 = arith.constant 0 : i32
    %c0_i32_0 = arith.constant 0 : i32
    %c0_i32_1 = arith.constant 0 : i32
    return %c0_i32, %arg0, %c0_i32_0 : i32, i32, i32
  }
  func.func @transform_4(%arg0: i32) -> (i32, i32, i32) {
    %c0_i32 = arith.constant 0 : i32
    %c0_i32_0 = arith.constant 0 : i32
    %c0_i32_1 = arith.constant 0 : i32
    return %c0_i32, %arg0, %c0_i32_0 : i32, i32, i32
  }
}

</mosaic_0001>

<bundles_post_ra>
// kernel: custom-call.30
= control target key start
LH: loop header
LB: loop body
LE: loop exit
PB: predicated region body
PF: predicated region fallthrough
CT: control target
= control target key end

     0   :  { %5 = vsyncpa [#allocation4], 0  ;;  %s878_s0 = inlined_call_operand.vmem [shape: f32[13,13], index: 0, kind: input, shape index: {}]   ;;  %s879_s1 = inlined_call_operand.vmem [shape: f32[13,13], index: 1, kind: output, shape index: {0}]   ;;  %s880_s2 = inlined_call_operand.hbm [shape: s32[13], index: 2, kind: output, shape index: {1}]   ;;  %s881_s3 = inlined_call_operand.vmem [shape: s32[13], index: 3, kind: output, shape index: {2}]  }
   0x1   :  { %s19_s14 = scalar_lea.vmem %s878_s0, 8 }
   0x2   :  { %p454_p0 = scmp.gt.s32.totalorder %s878_s0, %s19_s14 }
   0x3   :  { %s747_s17 = smov (!%p454_p0), [#allocation0]   ;;  %s751_s20 = smov (!%p454_p0), %s878_s0  }
   0x4   :  { %455 = sbr.rel (%p454_p0) target bundleno = 21 (0x15), region = 157 }
   0xb LB: > { %v53_v0 = vld [vmem:[%s753_s20] sm:$0xff]  ;;  %s55_s20 = scalar_lea.vmem %s753_s20, 8   ;;  %s753_s20 = sphi %s751_s20, %s55_s20   ;;  %s749_s17 = sphi %s747_s17, %s56_s17  }
   0xc   : > { %54 = vst [vmem:[%s749_s17] sm:$0xff] %v53_v0  ;;  %s56_s17 = scalar_lea.vmem %s749_s17, 8   ;;  %p50_p1 = scmp.gt.s32.totalorder %s55_s20, %s19_s14 }
   0xe   :  { %52 = sbr.rel (!%p50_p1) target bundleno = 11 (0xb), region = 163 }
  0x15 PF:  { %v68_v1 = vld [vmem:[#allocation0] sm:$0xff]  ;;  %v72_v2 = vld [vmem:[#allocation0 + $0x8] sm:$0xff]  ;;  %v75_v3 = vlaneseq  ;;  %v771_v4 = vmov 0   ;;  %s755_s0 = smov 0  }
  0x16   :  { %69 = vst [vmem:[#allocation1] sm:$0xff] %v68_v1  ;;  %73 = vst [vmem:[#allocation1 + $0x8] sm:$0xff] %v72_v2 }
  0x17   :  { %74 = vst [vmem:[#allocation2] sm:$0x1] %v771_v4  ;;  %v803_v5 = vshrl.u32 %v75_v3, 7 }
  0x18 LB: > { %s512_s21 = sshll.u32 %s757_s0, 3  ;;  %s83_s0 = sadd.s32 1, %s757_s0   ;;  %s757_s0 = sphi %s755_s0, %s83_s0  }
  0x19   : > { %v87_v6 = vstv %s512_s21  ;;  %s85_s22 = scalar_lea.vmem [#allocation7], %s512_s21  ;;  %p80_p2 = scmp.ge.s32.totalorder %s83_s0, 2  }
  0x1a   : > { %v88_v7 = vadd.s32 %v87_v6, %v803_v5  ;;  %s806_s23 = smov (%p80_p2), 0  }
  0x1b   :  { %82 = sbr.rel (!%p80_p2) target bundleno = 24 (0x18), region = 174 }
  0x1c   : > { %89 = vst [vmem:[%s85_s22] sm:$0xff] %v88_v7 }
  0x22 LB: > { %v100_v8 = vld [vmem:[#allocation1] sm:$0xff]  ;;  %v112_v9 = vld [vmem:[#allocation1 + $0x8] sm:$0xff]  ;;  %v812_v10 = vadd.s32 8, %v803_v5  ;;  %v815_v12 = vstv %s761_s23  ;;  %s158_s24 = ssub.s32 128, %s761_s23  ;;  %v164_v45 = vand.u32 127, %v75_v3  ;;  %s170_s25 = scalar_lea.vmem [#allocation1], %s761_s23  ;;  %s761_s23 = sphi %s806_s23, %s95_s23  }
  0x23   : > { %v101_v11 = vand.u32 2147483647, %v100_v8  ;;  %v113_v13 = vand.u32 2147483647, %v112_v9  ;;  %vm104_vm1 = vcmp.ge.s32.totalorder %v803_v5, %v815_v12  ;;  %v167_v48 = vld [vmem:[#allocation2] ss:$0 sm:$0xff] }
  0x24   : > { %vm117_vm0 = vcmp.lt.s32.totalorder %v812_v10, 13  ;;  %vm116_vm3 = vcmp.ge.s32.totalorder %v812_v10, %v815_v12  ;;  %vm188_vm15 = vcmp.gt.s32.totalorder %v164_v45, %v815_v12  ;;  %v172_v49 = vld [vmem:[%s170_s25] ss:$0 sm:$0xff]  ;;  %s176_s27 = scalar_lea.vmem [#allocation7], %s761_s23  ;;  %s95_s23 = sadd.s32 1, %s761_s23  }
  0x25   : > { %vm514_vm2 = vcmp.gt.f32.partialorder %v101_v11, -inf  ;;  %vm118_vm5 = vmand %vm116_vm3, %vm117_vm0  ;;  %vm211_vm0 = vcmp.gt.s32.totalorder %v812_v10, %v815_v12  ;;  %v178_v50 = vld [vmem:[%s176_s27] ss:$0 sm:$0xff]  ;;  %p92_p3 = scmp.ge.s32.totalorder %s95_s23, 13  }
  0x26   : > { %vm108_vm4 = vmand %vm104_vm1, %vm514_vm2  ;;  %vm165_vm1 = vcmp.eq.s32.totalorder %v164_v45, %v815_v12  ;;  %s763_s5 = smov (%p92_p3), %s879_s1   ;;  %s767_s6 = smov (%p92_p3), [#allocation1]  }
  0x27   : > { %v109_v14 = vsel %vm108_vm4, %v803_v5, %v815_v12  ;;  %v110_v15 = vsel %vm108_vm4, %v101_v11, -inf  ;;  %vm836_vm2 = vmand %vm211_vm0, %vm165_vm1  ;;  %vm196_vm4 = vcmp.gt.s32.totalorder %v803_v5, %v815_v12 }
  0x28   : > { %vm119_vm6 = vcmp.lt.f32.partialorder %v110_v15, %v113_v13 }
  0x29   : > { %vm120_vm7 = vmand %vm118_vm5, %vm119_vm6 }
  0x2a   : > { %v121_v16 = vsel %vm120_vm7, %v812_v10, %v109_v14  ;;  %v122_v17 = vsel %vm120_vm7, %v113_v13, %v110_v15  ;;  %vm200_vm6 = vmand %vm196_vm4, %vm165_vm1 }
  0x2b   : > { %v123_v18 = vrot.slane %v122_v17, 1  ;;  %v124_v19 = vrot.slane %v121_v16, 1 }
  0x2d   : > { %vm125_vm8 = vcmp.ge.f32.partialorder %v123_v18, %v122_v17  ;;  %v128_v20 = vrot.slane %v123_v18, 1  ;;  %v129_v21 = vrot.slane %v124_v19, 1 }
  0x2e   : > { %v126_v22 = vsel %vm125_vm8, %v123_v18, %v122_v17  ;;  %v127_v23 = vsel %vm125_vm8, %v124_v19, %v121_v16 }
  0x2f   : > { %vm130_vm9 = vcmp.ge.f32.partialorder %v128_v20, %v126_v22  ;;  %v133_v24 = vrot.slane %v128_v20, 1  ;;  %v134_v25 = vrot.slane %v129_v21, 1 }
  0x30   : > { %v131_v26 = vsel %vm130_vm9, %v128_v20, %v126_v22  ;;  %v132_v27 = vsel %vm130_vm9, %v129_v21, %v127_v23 }
  0x31   : > { %vm135_vm10 = vcmp.ge.f32.partialorder %v133_v24, %v131_v26  ;;  %v138_v28 = vrot.slane %v133_v24, 1  ;;  %v139_v29 = vrot.slane %v134_v25, 1 }
  0x32   : > { %v136_v30 = vsel %vm135_vm10, %v133_v24, %v131_v26  ;;  %v137_v31 = vsel %vm135_vm10, %v134_v25, %v132_v27 }
  0x33   : > { %vm140_vm11 = vcmp.ge.f32.partialorder %v138_v28, %v136_v30  ;;  %v143_v32 = vrot.slane %v138_v28, 1  ;;  %v144_v33 = vrot.slane %v139_v29, 1 }
  0x34   : > { %v141_v34 = vsel %vm140_vm11, %v138_v28, %v136_v30  ;;  %v142_v35 = vsel %vm140_vm11, %v139_v29, %v137_v31 }
  0x35   : > { %vm145_vm12 = vcmp.ge.f32.partialorder %v143_v32, %v141_v34  ;;  %v148_v36 = vrot.slane %v143_v32, 1  ;;  %v149_v37 = vrot.slane %v144_v33, 1 }
  0x36   : > { %v146_v38 = vsel %vm145_vm12, %v143_v32, %v141_v34  ;;  %v147_v39 = vsel %vm145_vm12, %v144_v33, %v142_v35 }
  0x37   : > { %vm150_vm13 = vcmp.ge.f32.partialorder %v148_v36, %v146_v38  ;;  %v153_v40 = vrot.slane %v148_v36, 1  ;;  %v154_v41 = vrot.slane %v149_v37, 1 }
  0x38   : > { %v151_v42 = vsel %vm150_vm13, %v148_v36, %v146_v38  ;;  %v152_v43 = vsel %vm150_vm13, %v149_v37, %v147_v39 }
  0x39   : > { %vm155_vm14 = vcmp.ge.f32.partialorder %v153_v40, %v151_v42 }
  0x3a   : > { %v157_v44 = vsel %vm155_vm14, %v154_v41, %v152_v43 }
  0x3b   : > { %159 = vrot.lane.b32.xlu0 %v157_v44, %s158_s24 }
  0xad   : > { %v160_v47 = vpop.permute.xlu0 %159 }
  0xae   : > { %522 = vpush %v160_v47 }
  0xdf   : > { %s523_s26 = spop %522 }
  0xe0   : > { %v166_v51 = vstv %s523_s26  ;;  %s171_s28 = scalar_lea.vmem [#allocation1], %s523_s26  ;;  %s177_s29 = scalar_lea.vmem [#allocation7], %s523_s26 }
  0xe1   : > { %v168_v52 = vsel %vm165_vm1, %v166_v51, %v167_v48  ;;  %v173_v53 = vld [vmem:[%s171_s28] ss:$0 sm:$0xff] }
  0xe2   : > { %v179_v54 = vld [vmem:[%s177_s29] ss:$0 sm:$0xff]  ;;  %169 = vst [vmem:[#allocation2] sm:$0x1] %v168_v52  ;;  %174 = vst [vmem:[%s171_s28] sm:$0x1] %v172_v49  ;;  %vm182_vm3 = vcmp.ne.f32.partialorder %v173_v53, 0.0 }
  0xe3   : > { %180 = vst [vmem:[%s177_s29] sm:$0x1] %v178_v50  ;;  %175 = vst [vmem:[%s170_s25] sm:$0x1] %v173_v53  ;;  %v189_v2 = vsel %vm188_vm15, %v173_v53, 0.0 }
  0xe4   : > { %181 = vst [vmem:[%s176_s27] sm:$0x1] %v179_v54  ;;  %vm183_vm5 = vmand %vm165_vm1, %vm182_vm3 }
  0xe5   : > { %v184_v55 = vsel %vm183_vm5, %v173_v53, 1.0 }
  0xe6   : > { %v212_v56 = vsel %vm211_vm0, %v184_v55, 1.0  ;;  %v197_v57 = vsel %vm196_vm4, %v184_v55, 1.0 }
  0xe7   : > { %655 = vrcp.f32 %v212_v56 }
  0xe8   : > { %657 = vrcp.f32 %v197_v57 }
  0xe9   :  { %v275_v12 = vld [vmem:[#allocation2] sm:$0x1] (%p92_p3) }
  0xea   : > { %v208_v59 = vld [vmem:[#allocation1 + $0x8] sm:$0xff]  ;;  %v193_v62 = vld [vmem:[#allocation1] sm:$0xff]  ;;  %277 = vst [vmem:[#allocation3] sm:$0x1] (%p92_p3), %v275_v12 }
  0xeb   :  { %v222_v11 = vld [vmem:[#allocation7] sm:$0xff] (%p92_p3)  ;;  %v224_v13 = vld [vmem:[#allocation7 + $0x8] sm:$0xff] (%p92_p3) }
  0xf1   : > { %v656_v58 = vpop.eup %655 }
  0xf2   : > { %v658_v60 = vpop.eup %657  ;;  %v214_v61 = vmul.f32 %v656_v58, %v208_v59 }
  0xf3   : > { %v199_v63 = vmul.f32 %v658_v60, %v193_v62 }
  0xf4   : > { %v216_v0 = vsel %vm836_vm2, %v214_v61, 0.0 }
  0xf5   : > { %217 = vadd.xlane.f32.xlu1 %v216_v0  ;;  %v201_v1 = vsel %vm200_vm6, %v199_v63, 0.0 }
  0xf6   : > { %202 = vadd.xlane.f32.xlu0 %v201_v1 }
 0x123   :  { %239 = vxpose.xlu0.b32.start [1/2] (short) (narrow) (%p92_p3), %v222_v11, 8 }
 0x127   :  { %240 = vxpose.xlu0.b32.end [2/2] (short) (narrow) (%p92_p3), %v224_v13, 8 }
 0x182   : > { %v218_v4 = vpop.xlane.xlu1 %217  ;;  %94 = sbr.rel (!%p92_p3) target bundleno = 34 (0x22), region = 185 }
 0x183   : > { %v219_v6 = vmul.f32 %v218_v4, %v189_v2  ;;  %v203_v7 = vpop.xlane.xlu0 %202 }
 0x184   : > { %v204_v8 = vmul.f32 %v203_v7, %v189_v2 }
 0x185   : > { %v220_v9 = vsub.f32 %v214_v61, %v219_v6 }
 0x186   : > { %v205_v10 = vsub.f32 %v199_v63, %v204_v8 }
 0x187   : > { %221 = vst [vmem:[#allocation1 + $0x8] sm:$0xff] %v220_v9 }
 0x188   : > { %206 = vst [vmem:[#allocation1] sm:$0xff] %v205_v10 }
 0x1a3   :  { %v255_v14 = vpop.trf.xlu0 }
 0x1a4   :  { %271 = vst [vmem:[#allocation5] sm:$0x1] %v255_v14 }
 0x1ab   :  { %v281_v15 = vld [vmem:[#allocation5] sm:$0x1] }
 0x1ac   :  { %283 = vst [vmem:[#allocation6] sm:$0x1] %v281_v15 }
 0x1ad LB: > { %v331_v16 = vld [vmem:[%s769_s6] sm:$0xff]  ;;  %s333_s6 = scalar_lea.vmem %s769_s6, 8   ;;  %s769_s6 = sphi %s767_s6, %s333_s6   ;;  %s765_s5 = sphi %s763_s5, %s334_s5  }
 0x1ae   : > { %332 = vst [vmem:[%s765_s5] sm:$0xff] %v331_v16  ;;  %s334_s5 = scalar_lea.vmem %s765_s5, 8   ;;  %p328_p4 = scmp.gt.s32.totalorder %s333_s6, [#allocation1 + $0x8] }
 0x1af   :  { %s772_s7 = smov (%p328_p4), [#allocation3]  }
 0x1b0   :  { %330 = sbr.rel (!%p328_p4) target bundleno = 429 (0x1ad), region = 207  ;;  %s351_s8 = sshll.u32 (%p328_p4), %s772_s7, 4  ;;  %s352_s8 = int_to_ptr.vmem [resolvable:$true] %s351_s8 }
 0x1b1   :  { %s659_s1 = scalar_lea.vmem (%p328_p4), %s352_s8, 16  ;;  %s663_s11 = scalar_lea.vmem (%p328_p4), %s352_s8, 32 }
 0x1b2   :  { %p660_p5 = scmp.ne.s32.totalorder (%p328_p4), %s352_s8, %s659_s1  ;;  %p664_p6 = scmp.lt.s32.totalorder (%p328_p4), %s352_s8, %s352_s8 }
 0x1b3   :  { %v417_v3 = vld [vmem:[#allocation6] sm:$0x1] (%p328_p4)  ;;  %p665_p7 = scmp.lt.s32.totalorder (%p328_p4), %s663_s11, %s659_s1 }
 0x1b4   :  { %418 = vst [vmem:[%s881_s3] sm:$0x1] (%p328_p4), %v417_v3 }
 0x1b5   :  { %p666_p8 = por (%p328_p4), %p665_p7, %p664_p6 }
 0x1b7   :  { %p667_p9 = pnand %p666_p8, %p660_p5 }
 0x1b9   :  { %670 = shalt.err (!%p667_p9)
}
 0x1ba   :  { %s671_s14 = scalar_lea.hbm %s880_s2, 16 }
 0x1bb   :  { %p672_p10 = scmp.ne.s32.totalorder %s880_s2, %s671_s14  ;;  %p675_p11 = scmp.lt.u32.totalorder %s671_s14, %s880_s2 }
 0x1bd   :  { %p677_p12 = pnand %p675_p11, %p672_p10 }
 0x1bf   :  { %680 = shalt.err (!%p677_p12)
}
 0x1c0   :  { %354 = dma.vmem_to_hbm [thread:$0]  %s352_s8, 16, %s880_s2, [#allocation4]  }
 0x1c1   :  { %745 = dma.done.wait [#allocation4], 16  }
 0x1c2   :  { %746 = vsyncadd [#allocation4], 4294967280 }
 0x1c3   :  { %424 = vsyncpa [#allocation4], 1 }

// kernel: custom-call.28
= control target key start
LH: loop header
LB: loop body
LE: loop exit
PB: predicated region body
PF: predicated region fallthrough
CT: control target
= control target key end

     0   :  { %v38_v0 = vlaneseq  ;;  %v301_v13 = vmov -1.0   ;;  %v302_v28 = vmov 0.0   ;;  %s401_s0 = inlined_call_operand.vmem [shape: f32[1,13,13], index: 0, kind: input, shape index: {}]   ;;  %s402_s1 = inlined_call_operand.vmem [shape: f32[1,13,13], index: 1, kind: output, shape index: {}]  }
   0x1   :  { %v33_v3 = vld [vmem:[%s401_s0 + $0x8] sm:$0xff]  ;;  %v31_v7 = vld [vmem:[%s401_s0] sm:$0xff] }
   0x2   :  { %v313_v1 = vand.u32 127, %v38_v0  ;;  %v42_v2 = vshrl.u32 %v38_v0, 7 }
   0x4   :  { %vm40_vm0 = vcmp.lt.s32.totalorder %v313_v1, 13  ;;  %v59_v4 = vadd.s32 8, %v42_v2  ;;  %vm49_vm4 = vcmp.le.s32.totalorder %v42_v2, %v313_v1  ;;  %vm86_vm6 = vcmp.eq.s32.totalorder %v313_v1, 12 }
   0x5   :  { %vm325_vm5 = vmand %vm49_vm4, %vm40_vm0  ;;  %v87_v14 = vsel %vm86_vm6, 1.0, %v301_v13  ;;  %vm44_vm8 = vcmp.eq.s32.totalorder %v42_v2, %v313_v1  ;;  %vm94_vm9 = vcmp.eq.s32.totalorder %v313_v1, 11  ;;  %vm76_vm10 = vcmp.eq.s32.totalorder %v313_v1, %v42_v2 }
   0x6   :  { %vm60_vm1 = vcmp.eq.s32.totalorder %v59_v4, %v313_v1  ;;  %vm65_vm2 = vcmp.le.s32.totalorder %v59_v4, %v313_v1  ;;  %v51_v9 = vsel %vm325_vm5, %v31_v7, 0.0  ;;  %vm83_vm7 = vcmp.eq.s32.totalorder %v313_v1, %v59_v4 }
   0x7   :  { %v62_v5 = vsel %vm60_vm1, %v33_v3, 0.0  ;;  %vm66_vm3 = vmand %vm65_vm2, %vm40_vm0  ;;  %v88_v15 = vsel %vm83_vm7, %v87_v14, 0.0  ;;  %v46_v19 = vsel %vm44_vm8, %v31_v7, 0.0  ;;  %v77_v29 = vsel %vm76_vm10, -1.0, %v302_v28 }
   0x8   :  { %v67_v6 = vsel %vm66_vm3, %v33_v3, 0.0  ;;  %63 = vadd.xlane.f32.xlu0 %v62_v5  ;;  %vm104_vm11 = vcmp.eq.s32.totalorder %v313_v1, 10  ;;  %vm134_vm12 = vcmp.eq.s32.totalorder %v313_v1, 7  ;;  %vm114_vm13 = vcmp.eq.s32.totalorder %v313_v1, 9 }
   0x9   :  { %vm148_vm14 = vcmp.eq.s32.totalorder %v313_v1, 6  ;;  %vm124_vm15 = vcmp.eq.s32.totalorder %v313_v1, 8  ;;  %vm162_vm0 = vcmp.eq.s32.totalorder %v313_v1, 5  ;;  %vm176_vm1 = vcmp.eq.s32.totalorder %v313_v1, 4 }
   0xa   :  { %vm190_vm2 = vcmp.eq.s32.totalorder %v313_v1, 3  ;;  %vm204_vm3 = vcmp.eq.s32.totalorder %v313_v1, 2  ;;  %vm218_vm4 = vcmp.eq.s32.totalorder %v313_v1, 1  ;;  %vm231_vm5 = vcmp.eq.s32.totalorder %v313_v1, 0 }
  0x95   :  { %v331_v10 = vpop.xlane.xlu0 %63 }
  0x96   :  { %297 = vrcp.f32 %v331_v10  ;;  %vm247_vm7 = vweird.f32 %v331_v10 }
  0xa0   :  { %v334_v11 = vpop.eup %297 }
  0xa1   :  { %v69_v12 = vmul.f32 %v334_v11, %v67_v6 }
  0xa3   :  { %70 = vst [vmem:[#allocation2 + $0x8] sm:$0xff] %v69_v12 }
  0xaa   :  { %v90_v16 = vld [vmem:[#allocation2 + $0xb] ss:$0 sm:$0xff]  ;;  %v100_v20 = vld [vmem:[#allocation2 + $0xa] ss:$0 sm:$0xff]  ;;  %v110_v33 = vld [vmem:[#allocation2 + $0x9] ss:$0 sm:$0xff] }
  0xab   :  { %v91_v17 = vxor.u32 2147483648, %v90_v16  ;;  %v101_v22 = vxor.u32 2147483648, %v100_v20  ;;  %v111_v35 = vxor.u32 2147483648, %v110_v33  ;;  %v120_v43 = vld [vmem:[#allocation2 + $0x8] ss:$0 sm:$0xff] }
  0xac   :  { %v121_v45 = vxor.u32 2147483648, %v120_v43 }
  0xad   :  { %v95_v18 = vmul.f32 %v91_v17, %v88_v15 }
  0xaf   :  { %96 = vadd.xlane.f32.xlu0 %v95_v18 }
  0xb3   :  { %47 = vadd.xlane.f32.xlu0 %v46_v19 }
 0x13c   :  { %v97_v21 = vpop.xlane.xlu0 %96 }
 0x13d   :  { %v98_v23 = vsel %vm94_vm9, %v97_v21, %v88_v15 }
 0x13e   :  { %v105_v24 = vmul.f32 %v101_v22, %v98_v23 }
 0x140   :  { %106 = vadd.xlane.f32.xlu1 %v105_v24  ;;  %v341_v25 = vpop.xlane.xlu0 %47 }
 0x141   :  { %299 = vrcp.f32 %v341_v25  ;;  %vm242_vm6 = vweird.f32 %v341_v25 }
 0x14b   :  { %v344_v26 = vpop.eup %299 }
 0x14c   :  { %v53_v27 = vmul.f32 %v344_v26, %v51_v9 }
 0x14e   :  { %54 = vst [vmem:[#allocation2] sm:$0xff] %v53_v27 }
 0x155   :  { %v130_v30 = vld [vmem:[#allocation2 + $0x7] ss:$0 sm:$0xff]  ;;  %v144_v38 = vld [vmem:[#allocation2 + $0x6] ss:$0 sm:$0xff]  ;;  %v158_v48 = vld [vmem:[#allocation2 + $0x5] ss:$0 sm:$0xff] }
 0x156   :  { %v131_v31 = vxor.u32 2147483648, %v130_v30  ;;  %v145_v39 = vxor.u32 2147483648, %v144_v38  ;;  %v159_v49 = vxor.u32 2147483648, %v158_v48  ;;  %v172_v56 = vld [vmem:[#allocation2 + $0x4] ss:$0 sm:$0xff] }
 0x157   :  { %v173_v58 = vxor.u32 2147483648, %v172_v56  ;;  %v186_v0 = vld [vmem:[#allocation2 + $0x3] ss:$0 sm:$0xff]  ;;  %v200_v9 = vld [vmem:[#allocation2 + $0x2] ss:$0 sm:$0xff] }
 0x158   :  { %v135_v32 = vmul.f32 %v131_v31, %v77_v29  ;;  %v187_v3 = vxor.u32 2147483648, %v186_v0  ;;  %v201_v13 = vxor.u32 2147483648, %v200_v9  ;;  %v214_v19 = vld [vmem:[#allocation2 + $0x1] ss:$0 sm:$0xff] }
 0x159   :  { %v215_v21 = vxor.u32 2147483648, %v214_v19 }
 0x15a   :  { %136 = vadd.xlane.f32.xlu0 %v135_v32 }
 0x1cd   :  { %v107_v34 = vpop.xlane.xlu1 %106 }
 0x1ce   :  { %v108_v36 = vsel %vm104_vm11, %v107_v34, %v98_v23 }
 0x1cf   :  { %v115_v37 = vmul.f32 %v111_v35, %v108_v36 }
 0x1d1   :  { %116 = vadd.xlane.f32.xlu1 %v115_v37 }
 0x1e7   :  { %v137_v40 = vpop.xlane.xlu0 %136 }
 0x1e8   :  { %v138_v41 = vsel %vm134_vm12, %v137_v40, %v77_v29  ;;  %v227_v29 = vld [vmem:[#allocation2] ss:$0 sm:$0xff] }
 0x1e9   :  { %v149_v42 = vmul.f32 %v145_v39, %v138_v41 }
 0x1eb   :  { %150 = vadd.xlane.f32.xlu0 %v149_v42 }
 0x25e   :  { %v117_v44 = vpop.xlane.xlu1 %116 }
 0x25f   :  { %v118_v46 = vsel %vm114_vm13, %v117_v44, %v108_v36 }
 0x260   :  { %v125_v47 = vmul.f32 %v121_v45, %v118_v46 }
 0x262   :  { %126 = vadd.xlane.f32.xlu1 %v125_v47 }
 0x278   :  { %v151_v50 = vpop.xlane.xlu0 %150 }
 0x279   :  { %v152_v51 = vsel %vm148_vm14, %v151_v50, %v138_v41 }
 0x27a   :  { %v163_v52 = vmul.f32 %v159_v49, %v152_v51 }
 0x27c   :  { %164 = vadd.xlane.f32.xlu0 %v163_v52 }
 0x2ef   :  { %v127_v53 = vpop.xlane.xlu1 %126 }
 0x2f0   :  { %v128_v54 = vsel %vm124_vm15, %v127_v53, %v118_v46 }
 0x2f1   :  { %v139_v55 = vmul.f32 %v131_v31, %v128_v54  ;;  %v228_v31 = vxor.u32 2147483648, %v227_v29 }
 0x2f3   :  { %140 = vadd.xlane.f32.xlu1 %v139_v55 }
 0x309   :  { %v165_v57 = vpop.xlane.xlu0 %164 }
 0x30a   :  { %v166_v59 = vsel %vm162_vm0, %v165_v57, %v152_v51 }
 0x30b   :  { %v177_v60 = vmul.f32 %v173_v58, %v166_v59 }
 0x30d   :  { %178 = vadd.xlane.f32.xlu0 %v177_v60 }
 0x380   :  { %v141_v61 = vpop.xlane.xlu1 %140 }
 0x381   :  { %v142_v62 = vsel %vm134_vm12, %v141_v61, %v128_v54 }
 0x382   :  { %v153_v63 = vmul.f32 %v145_v39, %v142_v62 }
 0x384   :  { %154 = vadd.xlane.f32.xlu1 %v153_v63 }
 0x39a   :  { %v179_v2 = vpop.xlane.xlu0 %178 }
 0x39b   :  { %v180_v4 = vsel %vm176_vm1, %v179_v2, %v166_v59 }
 0x39c   :  { %v191_v5 = vmul.f32 %v187_v3, %v180_v4 }
 0x39e   :  { %192 = vadd.xlane.f32.xlu0 %v191_v5 }
 0x411   :  { %v155_v6 = vpop.xlane.xlu1 %154 }
 0x412   :  { %v156_v7 = vsel %vm148_vm14, %v155_v6, %v142_v62 }
 0x413   :  { %v167_v8 = vmul.f32 %v159_v49, %v156_v7 }
 0x415   :  { %168 = vadd.xlane.f32.xlu1 %v167_v8 }
 0x42b   :  { %v193_v12 = vpop.xlane.xlu0 %192 }
 0x42c   :  { %v194_v14 = vsel %vm190_vm2, %v193_v12, %v180_v4 }
 0x42d   :  { %v205_v15 = vmul.f32 %v201_v13, %v194_v14 }
 0x42f   :  { %206 = vadd.xlane.f32.xlu0 %v205_v15 }
 0x4a2   :  { %v169_v16 = vpop.xlane.xlu1 %168 }
 0x4a3   :  { %v170_v17 = vsel %vm162_vm0, %v169_v16, %v156_v7 }
 0x4a4   :  { %v181_v18 = vmul.f32 %v173_v58, %v170_v17 }
 0x4a6   :  { %182 = vadd.xlane.f32.xlu1 %v181_v18 }
 0x4bc   :  { %v207_v20 = vpop.xlane.xlu0 %206 }
 0x4bd   :  { %v208_v22 = vsel %vm204_vm3, %v207_v20, %v194_v14 }
 0x4be   :  { %v219_v23 = vmul.f32 %v215_v21, %v208_v22 }
 0x4c0   :  { %220 = vadd.xlane.f32.xlu0 %v219_v23 }
 0x533   :  { %v183_v24 = vpop.xlane.xlu1 %182 }
 0x534   :  { %v184_v27 = vsel %vm176_vm1, %v183_v24, %v170_v17 }
 0x535   :  { %v195_v28 = vmul.f32 %v187_v3, %v184_v27 }
 0x537   :  { %196 = vadd.xlane.f32.xlu1 %v195_v28 }
 0x54d   :  { %v221_v30 = vpop.xlane.xlu0 %220 }
 0x54e   :  { %v222_v32 = vsel %vm218_vm4, %v221_v30, %v208_v22 }
 0x54f   :  { %v232_v33 = vmul.f32 %v228_v31, %v222_v32 }
 0x551   :  { %233 = vadd.xlane.f32.xlu0 %v232_v33 }
 0x5c4   :  { %v197_v34 = vpop.xlane.xlu1 %196 }
 0x5c5   :  { %v198_v35 = vsel %vm190_vm2, %v197_v34, %v184_v27 }
 0x5c6   :  { %v209_v36 = vmul.f32 %v201_v13, %v198_v35 }
 0x5c8   :  { %210 = vadd.xlane.f32.xlu1 %v209_v36 }
 0x5de   :  { %v234_v37 = vpop.xlane.xlu0 %233 }
 0x5df   :  { %v235_v38 = vsel %vm231_vm5, %v234_v37, %v222_v32 }
 0x5e0   :  { %v241_v39 = vmul.f32 %v344_v26, %v235_v38 }
 0x5e2   :  { %v243_v40 = vsel %vm242_vm6, %v235_v38, %v241_v39 }
 0x5e3   :  { %281 = vst [vmem:[%s402_s1] sm:$0xff] %v243_v40 }
 0x655   :  { %v211_v41 = vpop.xlane.xlu1 %210 }
 0x656   :  { %v212_v42 = vsel %vm204_vm3, %v211_v41, %v198_v35 }
 0x657   :  { %v223_v43 = vmul.f32 %v215_v21, %v212_v42 }
 0x659   :  { %224 = vadd.xlane.f32.xlu1 %v223_v43 }
 0x6e6   :  { %v225_v44 = vpop.xlane.xlu1 %224 }
 0x6e7   :  { %v226_v45 = vsel %vm218_vm4, %v225_v44, %v212_v42 }
 0x6e8   :  { %v236_v46 = vmul.f32 %v228_v31, %v226_v45 }
 0x6ea   :  { %237 = vadd.xlane.f32.xlu1 %v236_v46 }
 0x777   :  { %v238_v26 = vpop.xlane.xlu1 %237 }
 0x778   :  { %v239_v25 = vsel %vm231_vm5, %v238_v26, %v226_v45 }
 0x779   :  { %v246_v47 = vmul.f32 %v334_v11, %v239_v25 }
 0x77b   :  { %v248_v48 = vsel %vm247_vm7, %v239_v25, %v246_v47 }
 0x77c   :  { %283 = vst [vmem:[%s402_s1 + $0x8] sm:$0xff] %v248_v48 }

// kernel: custom-call.29
= control target key start
LH: loop header
LB: loop body
LE: loop exit
PB: predicated region body
PF: predicated region fallthrough
CT: control target
= control target key end

     0   :  { %v38_v0 = vlaneseq  ;;  %v290_v9 = vmov -1.0   ;;  %v291_v53 = vmov 0.0   ;;  %s356_s0 = inlined_call_operand.vmem [shape: f32[1,13,13], index: 0, kind: input, shape index: {}]   ;;  %s357_s1 = inlined_call_operand.vmem [shape: f32[1,13,13], index: 1, kind: output, shape index: {}]  }
   0x1   :  { %v31_v1 = vld [vmem:[%s356_s0] sm:$0xff]  ;;  %v33_v36 = vld [vmem:[%s356_s0 + $0x8] sm:$0xff] }
   0x2   :  { %v305_v2 = vand.u32 127, %v38_v0  ;;  %v42_v3 = vshrl.u32 %v38_v0, 7 }
   0x4   :  { %vm44_vm0 = vcmp.eq.s32.totalorder %v42_v3, %v305_v2  ;;  %vm40_vm1 = vcmp.lt.s32.totalorder %v305_v2, 13  ;;  %vm49_vm2 = vcmp.ge.s32.totalorder %v42_v3, %v305_v2  ;;  %vm79_vm4 = vcmp.eq.s32.totalorder %v305_v2, 0 }
   0x5   :  { %v46_v4 = vsel %vm44_vm0, %v31_v1, 0.0  ;;  %vm50_vm3 = vmand %vm49_vm2, %vm40_vm1  ;;  %vm76_vm5 = vcmp.eq.s32.totalorder %v305_v2, %v42_v3  ;;  %v80_v10 = vsel %vm79_vm4, 1.0, %v290_v9  ;;  %vm94_vm6 = vcmp.eq.s32.totalorder %v305_v2, 1 }
   0x6   :  { %47 = vadd.xlane.f32.xlu0 %v46_v4  ;;  %v51_v6 = vsel %vm50_vm3, %v31_v1, 0.0  ;;  %v81_v11 = vsel %vm76_vm5, %v80_v10, 0.0  ;;  %vm104_vm7 = vcmp.eq.s32.totalorder %v305_v2, 2  ;;  %vm114_vm8 = vcmp.eq.s32.totalorder %v305_v2, 3 }
   0x7   :  { %vm124_vm9 = vcmp.eq.s32.totalorder %v305_v2, 4  ;;  %v59_v31 = vadd.s32 8, %v42_v3  ;;  %vm134_vm11 = vcmp.eq.s32.totalorder %v305_v2, 5  ;;  %vm144_vm14 = vcmp.eq.s32.totalorder %v305_v2, 6 }
   0x8   :  { %vm154_vm0 = vcmp.eq.s32.totalorder %v305_v2, 7  ;;  %vm178_vm2 = vcmp.eq.s32.totalorder %v305_v2, 9  ;;  %vm192_vm3 = vcmp.eq.s32.totalorder %v305_v2, 10  ;;  %vm206_vm4 = vcmp.eq.s32.totalorder %v305_v2, 11 }
   0x9   :  { %vm60_vm10 = vcmp.eq.s32.totalorder %v59_v31, %v305_v2  ;;  %vm65_vm12 = vcmp.ge.s32.totalorder %v59_v31, %v305_v2  ;;  %vm87_vm15 = vcmp.eq.s32.totalorder %v305_v2, %v59_v31  ;;  %vm220_vm5 = vcmp.eq.s32.totalorder %v305_v2, 12 }
   0xa   :  { %v62_v37 = vsel %vm60_vm10, %v33_v36, 0.0  ;;  %vm66_vm13 = vmand %vm65_vm12, %vm40_vm1  ;;  %v88_v54 = vsel %vm87_vm15, -1.0, %v291_v53  ;;  %vm164_vm1 = vcmp.eq.s32.totalorder %v305_v2, 8 }
   0xb   :  { %v67_v44 = vsel %vm66_vm13, %v33_v36, 0.0 }
  0x93   :  { %v308_v5 = vpop.xlane.xlu0 %47 }
  0x94   :  { %286 = vrcp.f32 %v308_v5 }
  0x9e   :  { %v315_v7 = vpop.eup %286 }
  0x9f   :  { %v53_v8 = vmul.f32 %v315_v7, %v51_v6 }
  0xa1   :  { %54 = vst [vmem:[#allocation2] sm:$0xff] %v53_v8 }
  0xa8   :  { %v90_v12 = vld [vmem:[#allocation2 + $0x1] ss:$0 sm:$0xff]  ;;  %v100_v15 = vld [vmem:[#allocation2 + $0x2] ss:$0 sm:$0xff]  ;;  %v110_v20 = vld [vmem:[#allocation2 + $0x3] ss:$0 sm:$0xff] }
  0xa9   :  { %v91_v13 = vxor.u32 2147483648, %v90_v12  ;;  %v101_v17 = vxor.u32 2147483648, %v100_v15  ;;  %v111_v22 = vxor.u32 2147483648, %v110_v20  ;;  %v120_v25 = vld [vmem:[#allocation2 + $0x4] ss:$0 sm:$0xff] }
  0xaa   :  { %v121_v27 = vxor.u32 2147483648, %v120_v25  ;;  %v130_v30 = vld [vmem:[#allocation2 + $0x5] ss:$0 sm:$0xff]  ;;  %v140_v38 = vld [vmem:[#allocation2 + $0x6] ss:$0 sm:$0xff] }
  0xab   :  { %v95_v14 = vmul.f32 %v91_v13, %v81_v11  ;;  %v131_v33 = vxor.u32 2147483648, %v130_v30  ;;  %v141_v40 = vxor.u32 2147483648, %v140_v38  ;;  %v150_v47 = vld [vmem:[#allocation2 + $0x7] ss:$0 sm:$0xff] }
  0xac   :  { %v151_v50 = vxor.u32 2147483648, %v150_v47 }
  0xad   :  { %96 = vadd.xlane.f32.xlu0 %v95_v14 }
 0x13a   :  { %v97_v16 = vpop.xlane.xlu0 %96 }
 0x13b   :  { %v98_v18 = vsel %vm94_vm6, %v97_v16, %v81_v11 }
 0x13c   :  { %v105_v19 = vmul.f32 %v101_v17, %v98_v18 }
 0x13e   :  { %106 = vadd.xlane.f32.xlu1 %v105_v19 }
 0x1cb   :  { %v107_v21 = vpop.xlane.xlu1 %106 }
 0x1cc   :  { %v108_v23 = vsel %vm104_vm7, %v107_v21, %v98_v18  ;;  %vm231_vm7 = vweird.f32 %v308_v5 }
 0x1cd   :  { %v115_v24 = vmul.f32 %v111_v22, %v108_v23 }
 0x1cf   :  { %116 = vadd.xlane.f32.xlu1 %v115_v24 }
 0x25c   :  { %v117_v26 = vpop.xlane.xlu1 %116 }
 0x25d   :  { %v118_v28 = vsel %vm114_vm8, %v117_v26, %v108_v23 }
 0x25e   :  { %v125_v29 = vmul.f32 %v121_v27, %v118_v28 }
 0x260   :  { %126 = vadd.xlane.f32.xlu0 %v125_v29 }
 0x2ed   :  { %v127_v32 = vpop.xlane.xlu0 %126 }
 0x2ee   :  { %v128_v34 = vsel %vm124_vm9, %v127_v32, %v118_v28 }
 0x2ef   :  { %v135_v35 = vmul.f32 %v131_v33, %v128_v34 }
 0x2f1   :  { %136 = vadd.xlane.f32.xlu1 %v135_v35 }
 0x2f5   :  { %63 = vadd.xlane.f32.xlu1 %v62_v37 }
 0x37e   :  { %v137_v39 = vpop.xlane.xlu1 %136 }
 0x37f   :  { %v138_v41 = vsel %vm134_vm11, %v137_v39, %v128_v34 }
 0x380   :  { %v145_v42 = vmul.f32 %v141_v40, %v138_v41 }
 0x382   :  { %146 = vadd.xlane.f32.xlu0 %v145_v42  ;;  %v329_v43 = vpop.xlane.xlu1 %63 }
 0x383   :  { %288 = vrcp.f32 %v329_v43  ;;  %vm236_vm6 = vweird.f32 %v329_v43 }
 0x38d   :  { %v335_v45 = vpop.eup %288 }
 0x38e   :  { %v69_v46 = vmul.f32 %v335_v45, %v67_v44 }
 0x390   :  { %70 = vst [vmem:[#allocation2 + $0x8] sm:$0xff] %v69_v46 }
 0x397   :  { %v160_v48 = vld [vmem:[#allocation2 + $0x8] ss:$0 sm:$0xff]  ;;  %v174_v59 = vld [vmem:[#allocation2 + $0x9] ss:$0 sm:$0xff]  ;;  %v188_v4 = vld [vmem:[#allocation2 + $0xa] ss:$0 sm:$0xff] }
 0x398   :  { %v161_v51 = vxor.u32 2147483648, %v160_v48  ;;  %v175_v62 = vxor.u32 2147483648, %v174_v59  ;;  %v189_v9 = vxor.u32 2147483648, %v188_v4  ;;  %v202_v14 = vld [vmem:[#allocation2 + $0xb] ss:$0 sm:$0xff] }
 0x399   :  { %v203_v17 = vxor.u32 2147483648, %v202_v14  ;;  %v216_v22 = vld [vmem:[#allocation2 + $0xc] ss:$0 sm:$0xff] }
 0x39a   :  { %v169_v56 = vmul.f32 %v161_v51, %v88_v54  ;;  %v217_v25 = vxor.u32 2147483648, %v216_v22 }
 0x40f   :  { %v147_v49 = vpop.xlane.xlu0 %146 }
 0x410   :  { %v148_v52 = vsel %vm144_vm14, %v147_v49, %v138_v41 }
 0x411   :  { %v155_v55 = vmul.f32 %v151_v50, %v148_v52 }
 0x413   :  { %156 = vadd.xlane.f32.xlu0 %v155_v55 }
 0x417   :  { %170 = vadd.xlane.f32.xlu0 %v169_v56 }
 0x4a0   :  { %v157_v57 = vpop.xlane.xlu0 %156 }
 0x4a1   :  { %v158_v58 = vsel %vm154_vm0, %v157_v57, %v148_v52 }
 0x4a2   :  { %v165_v60 = vmul.f32 %v161_v51, %v158_v58 }
 0x4a4   :  { %v171_v61 = vpop.xlane.xlu0 %170  ;;  %166 = vadd.xlane.f32.xlu1 %v165_v60 }
 0x4a5   :  { %v172_v63 = vsel %vm164_vm1, %v171_v61, %v88_v54 }
 0x4a6   :  { %v183_v0 = vmul.f32 %v175_v62, %v172_v63 }
 0x4a8   :  { %184 = vadd.xlane.f32.xlu0 %v183_v0 }
 0x531   :  { %v167_v1 = vpop.xlane.xlu1 %166 }
 0x532   :  { %v168_v3 = vsel %vm164_vm1, %v167_v1, %v158_v58 }
 0x533   :  { %v179_v6 = vmul.f32 %v175_v62, %v168_v3 }
 0x535   :  { %v185_v8 = vpop.xlane.xlu0 %184  ;;  %180 = vadd.xlane.f32.xlu1 %v179_v6 }
 0x536   :  { %v186_v10 = vsel %vm178_vm2, %v185_v8, %v172_v63 }
 0x537   :  { %v197_v11 = vmul.f32 %v189_v9, %v186_v10 }
 0x539   :  { %198 = vadd.xlane.f32.xlu0 %v197_v11 }
 0x5c2   :  { %v181_v12 = vpop.xlane.xlu1 %180 }
 0x5c3   :  { %v182_v13 = vsel %vm178_vm2, %v181_v12, %v168_v3 }
 0x5c4   :  { %v193_v15 = vmul.f32 %v189_v9, %v182_v13 }
 0x5c6   :  { %v199_v16 = vpop.xlane.xlu0 %198  ;;  %194 = vadd.xlane.f32.xlu1 %v193_v15 }
 0x5c7   :  { %v200_v18 = vsel %vm192_vm3, %v199_v16, %v186_v10 }
 0x5c8   :  { %v211_v19 = vmul.f32 %v203_v17, %v200_v18 }
 0x5ca   :  { %212 = vadd.xlane.f32.xlu0 %v211_v19 }
 0x653   :  { %v195_v20 = vpop.xlane.xlu1 %194 }
 0x654   :  { %v196_v21 = vsel %vm192_vm3, %v195_v20, %v182_v13 }
 0x655   :  { %v207_v23 = vmul.f32 %v203_v17, %v196_v21 }
 0x657   :  { %v213_v24 = vpop.xlane.xlu0 %212  ;;  %208 = vadd.xlane.f32.xlu1 %v207_v23 }
 0x658   :  { %v214_v26 = vsel %vm206_vm4, %v213_v24, %v200_v18 }
 0x659   :  { %v225_v27 = vmul.f32 %v217_v25, %v214_v26 }
 0x65b   :  { %226 = vadd.xlane.f32.xlu0 %v225_v27 }
 0x6e4   :  { %v209_v28 = vpop.xlane.xlu1 %208 }
 0x6e5   :  { %v210_v29 = vsel %vm206_vm4, %v209_v28, %v196_v21 }
 0x6e6   :  { %v221_v30 = vmul.f32 %v217_v25, %v210_v29 }
 0x6e8   :  { %v227_v31 = vpop.xlane.xlu0 %226  ;;  %222 = vadd.xlane.f32.xlu1 %v221_v30 }
 0x6e9   :  { %v228_v32 = vsel %vm220_vm5, %v227_v31, %v214_v26 }
 0x6ea   :  { %v235_v33 = vmul.f32 %v335_v45, %v228_v32 }
 0x6ec   :  { %v237_v34 = vsel %vm236_vm6, %v228_v32, %v235_v33 }
 0x6ed   :  { %272 = vst [vmem:[%s357_s1 + $0x8] sm:$0xff] %v237_v34 }
 0x775   :  { %v223_v35 = vpop.xlane.xlu1 %222 }
 0x776   :  { %v224_v36 = vsel %vm220_vm5, %v223_v35, %v210_v29 }
 0x777   :  { %v230_v37 = vmul.f32 %v315_v7, %v224_v36 }
 0x779   :  { %v232_v2 = vsel %vm231_vm7, %v224_v36, %v230_v37 }
 0x77a   :  { %270 = vst [vmem:[%s357_s1] sm:$0xff] %v232_v2 }

// kernel: tutte_varying_normal_forward.2
= control target key start
LH: loop header
LB: loop body
LE: loop exit
PB: predicated region body
PF: predicated region fallthrough
CT: control target
= control target key end

     0   :  { %10 = vsyncpa [#allocation3], 0  ;;  %s1554_s15 = smov 0   ;;  %s1556_s16 = smov 0   ;;  %s2335_s0 = inlined_call_operand.vmem [shape: f32[3,3], index: 0, kind: input, shape index: {}]   ;;  %s2336_s1 = inlined_call_operand.vmem [shape: f32[15,32,128], index: 1, kind: input, shape index: {}]   ;;  %s2337_s2 = inlined_call_operand.vmem [shape: f32[9,32,128], index: 2, kind: input, shape index: {}, may-alias: {2,4}]   ;;  %s2338_s3 = inlined_call_operand.vmem [shape: f32[9,32,128], index: 3, kind: output, shape index: {0}]   ;;  %s2339_s4 = inlined_call_operand.vmem [shape: f32[9,32,128], index: 4, kind: output, shape index: {1}, may-alias: {2,4}]  }
   0x1   :  { %s1558_s17 = smov 0  }
   0x2 LB: > { %s1570_s18 = sadd.s32 4294967295, %s1526_s17   ;;  %s1573_s19 = sadd.s32 1, %s1526_s17   ;;  %s1526_s17 = sphi %s1558_s17, %s2347_s17   ;;  %s1522_s16 = sphi %s1556_s16, %s2346_s16   ;;  %s1518_s15 = sphi %s1554_s15, %s2345_s15  }
   0x3   : > { %s41_s20 = ssub.s32 %s1526_s17, %s1573_s19  ;;  %s44_s21 = sadd.s32 1, %s1522_s16 }
   0x4   : > { %p42_p0 = scmp.eq.s32.totalorder %s41_s20, 0  ;;  %p51_p1 = scmp.ne.s32.totalorder %s1522_s16, %s1518_s15 }
   0x5   : > { %p52_p2 = scmp.eq.s32.totalorder %s1526_s17, 0  ;;  %p107_p3 = scmp.eq.s32.totalorder %s1570_s18, 1 }
   0x6   : > { %s1583_s22 = scalar_select %p42_p0, %s1522_s16, %s44_s21  }
   0x7   : > { %p1585_p4 = por %p52_p2, %p51_p1  ;;  %p1589_p5 = por %p107_p3, %p51_p1 }
   0x8   : > { %p1335_p6 = scmp.ge.s32.totalorder %s1526_s17, 1  ;;  %p146_p7 = scmp.lt.s32.totalorder %s1526_s17, 3 }
   0x9   : > { %s2341_s24 = scalar_select %p1589_p5, 1, 0 }
   0xa   : > { %p1450_p8 = scmp.eq.s32.totalorder %s1570_s18, 0  ;;  %p1596_p9 = pnand %p1335_p6, %p146_p7 }
   0xb   : > { %s159_s28 = sshll.u32 %s2335_s0, 4  ;;  %s160_s28 = int_to_ptr.vmem [resolvable:$true] %s159_s28 }
   0xc   : > { %p1446_p10 = pneg %p1596_p9  ;;  %s1485_s29 = scalar_lea.vmem %s160_s28, 64 }
   0xd   : > { %p1486_p12 = scmp.ne.s32.totalorder %s160_s28, %s1485_s29  ;;  %p1493_p2 = scmp.lt.s32.totalorder %s160_s28, %s160_s28 }
   0xe   : > { %p1447_p11 = pnand %p1450_p8, %p1446_p10  ;;  %p1494_p3 = scmp.lt.s32.totalorder %s1485_s29, %s1485_s29 }
  0x10   : > { %p1487_p13 = pneg %p1447_p11  ;;  %p1495_p6 = por %p1494_p3, %p1493_p2 }
  0x12   : > { %p1488_p0 = pnand %p1487_p13, %p1486_p12 }
  0x14   : > { %p1489_p1 = pneg %p1488_p0 }
  0x16   : > { %p1496_p7 = pnand %p1495_p6, %p1489_p1 }
  0x18   : > { %1499 = shalt.err (!%p1496_p7)
}
  0x19   : > { %s1528_s30 = smov [#allocation2]   ;;  %p1337_p5 = scmp.ge.s32.totalorder %s1526_s17, 2 }
  0x1a   : > { %1449 = dma.vmem_to_smem (!%p1447_p11), %s160_s28, 64, %s1528_s30, [#allocation3]  }
  0x1b   : > { %166 = sbr.rel (%p1337_p5) target bundleno = 66 (0x42), region = 20 }
  0x22   : > { %169 = sbr.rel (!%p1585_p4) target bundleno = 53 (0x35), region = 24  ;;  %s171_s5 = sand.u32 (%p1585_p4), 1, %s1522_s16  }
  0x23   : > { %s1434_s6 = sshll.u32 (%p1585_p4), %s1526_s17, 4  ;;  %s1438_s7 = smul.u32 (%p1585_p4), 240, %s171_s5 }
  0x24   : > { %s1615_s10 = scalar_lea.vmem (%p1585_p4), %s2336_s1, %s1434_s6 }
  0x25   : > { %v262_v0 = vld [vmem:[%s1615_s10] sm:$0xff] (%p1585_p4)  ;;  %v264_v1 = vld [vmem:[%s1615_s10 + $0x8] sm:$0xff] (%p1585_p4)  ;;  %s1623_s11 = scalar_lea.vmem (%p1585_p4), [#allocation4], %s1438_s7 }
  0x26   : > { %v266_v2 = vld [vmem:[%s1615_s10 + $0x20] sm:$0xff] (%p1585_p4)  ;;  %v268_v3 = vld [vmem:[%s1615_s10 + $0x28] sm:$0xff] (%p1585_p4)  ;;  %263 = vst [vmem:[%s1623_s11] sm:$0xff] (%p1585_p4), %v262_v0  ;;  %265 = vst [vmem:[%s1623_s11 + $0x8] sm:$0xff] (%p1585_p4), %v264_v1 }
  0x27   : > { %v270_v4 = vld [vmem:[%s1615_s10 + $0x40] sm:$0xff] (%p1585_p4)  ;;  %v272_v5 = vld [vmem:[%s1615_s10 + $0x48] sm:$0xff] (%p1585_p4)  ;;  %267 = vst [vmem:[%s1623_s11 + $0x10] sm:$0xff] (%p1585_p4), %v266_v2  ;;  %269 = vst [vmem:[%s1623_s11 + $0x18] sm:$0xff] (%p1585_p4), %v268_v3 }
  0x28   : > { %271 = vst [vmem:[%s1623_s11 + $0x20] sm:$0xff] (%p1585_p4), %v270_v4  ;;  %273 = vst [vmem:[%s1623_s11 + $0x28] sm:$0xff] (%p1585_p4), %v272_v5  ;;  %v274_v6 = vld [vmem:[%s1615_s10 + $0x60] sm:$0xff] (%p1585_p4)  ;;  %v276_v7 = vld [vmem:[%s1615_s10 + $0x68] sm:$0xff] (%p1585_p4) }
  0x29   : > { %v278_v8 = vld [vmem:[%s1615_s10 + $0x80] sm:$0xff]  ;;  %275 = vst [vmem:[%s1623_s11 + $0x30] sm:$0xff] %v274_v6  ;;  %277 = vst [vmem:[%s1623_s11 + $0x38] sm:$0xff] %v276_v7  ;;  %v280_v9 = vld [vmem:[%s1615_s10 + $0x88] sm:$0xff] }
  0x2a   : > { %279 = vst [vmem:[%s1623_s11 + $0x40] sm:$0xff] %v278_v8  ;;  %v282_v10 = vld [vmem:[%s1615_s10 + $0xa0] sm:$0xff]  ;;  %v284_v11 = vld [vmem:[%s1615_s10 + $0xa8] sm:$0xff]  ;;  %281 = vst [vmem:[%s1623_s11 + $0x48] sm:$0xff] %v280_v9 }
  0x2b   : > { %283 = vst [vmem:[%s1623_s11 + $0x50] sm:$0xff] %v282_v10  ;;  %285 = vst [vmem:[%s1623_s11 + $0x58] sm:$0xff] %v284_v11  ;;  %v286_v12 = vld [vmem:[%s1615_s10 + $0xc0] sm:$0xff]  ;;  %v288_v13 = vld [vmem:[%s1615_s10 + $0xc8] sm:$0xff] }
  0x2c   : > { %v290_v14 = vld [vmem:[%s1615_s10 + $0xe0] sm:$0xff]  ;;  %287 = vst [vmem:[%s1623_s11 + $0x60] sm:$0xff] %v286_v12  ;;  %289 = vst [vmem:[%s1623_s11 + $0x68] sm:$0xff] %v288_v13  ;;  %v292_v15 = vld [vmem:[%s1615_s10 + $0xe8] sm:$0xff] }
  0x2d   : > { %291 = vst [vmem:[%s1623_s11 + $0x70] sm:$0xff] %v290_v14  ;;  %v294_v16 = vld [vmem:[%s1615_s10 + $0x100] sm:$0xff]  ;;  %v296_v17 = vld [vmem:[%s1615_s10 + $0x108] sm:$0xff]  ;;  %293 = vst [vmem:[%s1623_s11 + $0x78] sm:$0xff] %v292_v15 }
  0x2e   : > { %295 = vst [vmem:[%s1623_s11 + $0x80] sm:$0xff] %v294_v16  ;;  %297 = vst [vmem:[%s1623_s11 + $0x88] sm:$0xff] %v296_v17  ;;  %v298_v18 = vld [vmem:[%s1615_s10 + $0x120] sm:$0xff]  ;;  %v300_v19 = vld [vmem:[%s1615_s10 + $0x128] sm:$0xff] }
  0x2f   : > { %v302_v20 = vld [vmem:[%s1615_s10 + $0x140] sm:$0xff]  ;;  %299 = vst [vmem:[%s1623_s11 + $0x90] sm:$0xff] %v298_v18  ;;  %301 = vst [vmem:[%s1623_s11 + $0x98] sm:$0xff] %v300_v19  ;;  %v304_v21 = vld [vmem:[%s1615_s10 + $0x148] sm:$0xff] }
  0x30   : > { %303 = vst [vmem:[%s1623_s11 + $0xa0] sm:$0xff] %v302_v20  ;;  %v306_v22 = vld [vmem:[%s1615_s10 + $0x160] sm:$0xff]  ;;  %v308_v23 = vld [vmem:[%s1615_s10 + $0x168] sm:$0xff]  ;;  %305 = vst [vmem:[%s1623_s11 + $0xa8] sm:$0xff] %v304_v21 }
  0x31   : > { %307 = vst [vmem:[%s1623_s11 + $0xb0] sm:$0xff] %v306_v22  ;;  %309 = vst [vmem:[%s1623_s11 + $0xb8] sm:$0xff] %v308_v23  ;;  %v310_v24 = vld [vmem:[%s1615_s10 + $0x180] sm:$0xff]  ;;  %v312_v25 = vld [vmem:[%s1615_s10 + $0x188] sm:$0xff] }
  0x32   : > { %v314_v26 = vld [vmem:[%s1615_s10 + $0x1a0] sm:$0xff]  ;;  %311 = vst [vmem:[%s1623_s11 + $0xc0] sm:$0xff] %v310_v24  ;;  %313 = vst [vmem:[%s1623_s11 + $0xc8] sm:$0xff] %v312_v25  ;;  %v316_v27 = vld [vmem:[%s1615_s10 + $0x1a8] sm:$0xff] }
  0x33   : > { %315 = vst [vmem:[%s1623_s11 + $0xd0] sm:$0xff] %v314_v26  ;;  %v318_v28 = vld [vmem:[%s1615_s10 + $0x1c0] sm:$0xff]  ;;  %v320_v29 = vld [vmem:[%s1615_s10 + $0x1c8] sm:$0xff]  ;;  %317 = vst [vmem:[%s1623_s11 + $0xd8] sm:$0xff] %v316_v27 }
  0x34   : > { %319 = vst [vmem:[%s1623_s11 + $0xe0] sm:$0xff] %v318_v28  ;;  %321 = vst [vmem:[%s1623_s11 + $0xe8] sm:$0xff] %v320_v29 }
  0x35 PF: > { %327 = sbr.rel (!%p1585_p4) target bundleno = 66 (0x42), region = 62  ;;  %s329_s12 = sand.u32 (%p1585_p4), 1, %s1522_s16  }
  0x36   : > { %s1435_s13 = sshll.u32 (%p1585_p4), %s1526_s17, 4  ;;  %s1439_s14 = smul.u32 (%p1585_p4), 144, %s329_s12 }
  0x37   : > { %s1686_s26 = scalar_lea.vmem (%p1585_p4), %s2337_s2, %s1435_s13 }
  0x38   : > { %v396_v30 = vld [vmem:[%s1686_s26] sm:$0xff] (%p1585_p4)  ;;  %v398_v31 = vld [vmem:[%s1686_s26 + $0x8] sm:$0xff] (%p1585_p4)  ;;  %s331_s17 = scalar_lea.vmem (%p1585_p4), [#allocation5], %s1439_s14 }
  0x39   : > { %v400_v32 = vld [vmem:[%s1686_s26 + $0x20] sm:$0xff] (%p1585_p4)  ;;  %v402_v33 = vld [vmem:[%s1686_s26 + $0x28] sm:$0xff] (%p1585_p4)  ;;  %397 = vst [vmem:[%s331_s17] sm:$0xff] (%p1585_p4), %v396_v30  ;;  %399 = vst [vmem:[%s331_s17 + $0x8] sm:$0xff] (%p1585_p4), %v398_v31 }
  0x3a   : > { %v404_v34 = vld [vmem:[%s1686_s26 + $0x40] sm:$0xff] (%p1585_p4)  ;;  %v406_v35 = vld [vmem:[%s1686_s26 + $0x48] sm:$0xff] (%p1585_p4)  ;;  %401 = vst [vmem:[%s331_s17 + $0x10] sm:$0xff] (%p1585_p4), %v400_v32  ;;  %403 = vst [vmem:[%s331_s17 + $0x18] sm:$0xff] (%p1585_p4), %v402_v33 }
  0x3b   : > { %405 = vst [vmem:[%s331_s17 + $0x20] sm:$0xff] (%p1585_p4), %v404_v34  ;;  %407 = vst [vmem:[%s331_s17 + $0x28] sm:$0xff] (%p1585_p4), %v406_v35  ;;  %v408_v36 = vld [vmem:[%s1686_s26 + $0x60] sm:$0xff] (%p1585_p4)  ;;  %v410_v37 = vld [vmem:[%s1686_s26 + $0x68] sm:$0xff] (%p1585_p4) }
  0x3c   : > { %v412_v38 = vld [vmem:[%s1686_s26 + $0x80] sm:$0xff]  ;;  %409 = vst [vmem:[%s331_s17 + $0x30] sm:$0xff] %v408_v36  ;;  %411 = vst [vmem:[%s331_s17 + $0x38] sm:$0xff] %v410_v37  ;;  %v414_v39 = vld [vmem:[%s1686_s26 + $0x88] sm:$0xff] }
  0x3d   : > { %413 = vst [vmem:[%s331_s17 + $0x40] sm:$0xff] %v412_v38  ;;  %v416_v40 = vld [vmem:[%s1686_s26 + $0xa0] sm:$0xff]  ;;  %v418_v41 = vld [vmem:[%s1686_s26 + $0xa8] sm:$0xff]  ;;  %415 = vst [vmem:[%s331_s17 + $0x48] sm:$0xff] %v414_v39 }
  0x3e   : > { %417 = vst [vmem:[%s331_s17 + $0x50] sm:$0xff] %v416_v40  ;;  %419 = vst [vmem:[%s331_s17 + $0x58] sm:$0xff] %v418_v41  ;;  %v420_v42 = vld [vmem:[%s1686_s26 + $0xc0] sm:$0xff]  ;;  %v422_v43 = vld [vmem:[%s1686_s26 + $0xc8] sm:$0xff] }
  0x3f   : > { %v424_v44 = vld [vmem:[%s1686_s26 + $0xe0] sm:$0xff]  ;;  %421 = vst [vmem:[%s331_s17 + $0x60] sm:$0xff] %v420_v42  ;;  %423 = vst [vmem:[%s331_s17 + $0x68] sm:$0xff] %v422_v43  ;;  %v426_v45 = vld [vmem:[%s1686_s26 + $0xe8] sm:$0xff] }
  0x40   : > { %425 = vst [vmem:[%s331_s17 + $0x70] sm:$0xff] %v424_v44  ;;  %v428_v46 = vld [vmem:[%s1686_s26 + $0x100] sm:$0xff]  ;;  %v430_v47 = vld [vmem:[%s1686_s26 + $0x108] sm:$0xff]  ;;  %427 = vst [vmem:[%s331_s17 + $0x78] sm:$0xff] %v426_v45 }
  0x41   : > { %429 = vst [vmem:[%s331_s17 + $0x80] sm:$0xff] %v428_v46  ;;  %431 = vst [vmem:[%s331_s17 + $0x88] sm:$0xff] %v430_v47 }
  0x42 PF: > { %440 = sbr.rel (%p1596_p9) target bundleno = 195 (0xc3), region = 100 }
  0x49   : > { %1513 = dma.done.wait (%p1450_p8), [#allocation3], 64  }
  0x4a   : > { %1515 = vsyncadd (%p1450_p8), [#allocation3], 4294967232  ;;  %s447_s23 = sand.u32 1, %s1518_s15  }
  0x4b   : > { %s1440_s27 = smul.u32 240, %s447_s23 }
  0x4c   : > { %s1713_s28 = smul.u32 144, %s447_s23 }
  0x4d   : > { %s1715_s29 = scalar_lea.vmem [#allocation4], %s1440_s27 }
  0x4e   : > { %s1718_s30 = scalar_lea.vmem [#allocation5], %s1713_s28 }
  0x4f   : > { %460 = sfence }
  0x50   : > { %v500_v48 = vld [vmem:[%s1715_s29] sm:$0xff]  ;;  %v1352_v49 = vld [vmem:[%s1715_s29 + $0x10] sm:$0xff]  ;;  %v501_v1 = vld [vmem:[%s1715_s29 + $0x8] sm:$0xff]  ;;  %s1735_s15 = sld [smem:[#allocation2]]  ;;  %s1784_s6 = sld [smem:[#allocation2 + $0x1]] }
  0x51   : > { %v1356_v50 = vld [vmem:[%s1715_s29 + $0x30] sm:$0xff]  ;;  %v1358_v51 = vld [vmem:[%s1715_s29 + $0x40] sm:$0xff]  ;;  %v1353_v6 = vld [vmem:[%s1715_s29 + $0x18] sm:$0xff]  ;;  %s1767_s25 = sld [smem:[#allocation2 + $0x80]]  ;;  %s1788_s7 = sld [smem:[#allocation2 + $0x81]] }
  0x52   : > { %v1360_v52 = vld [vmem:[%s1715_s29 + $0x50] sm:$0xff]  ;;  %v1362_v53 = vld [vmem:[%s1715_s29 + $0x60] sm:$0xff]  ;;  %v562_v54 = vsub.f32 %v500_v48, %v1356_v50  ;;  %v566_v60 = vsub.f32 %v1352_v49, %v1358_v51  ;;  %v1743_v7 = vld [vmem:[%s1715_s29 + $0x38] sm:$0xff]  ;;  %s1773_s5 = sld [smem:[#allocation2 + $0x100]]  ;;  %s1790_s8 = sld [smem:[#allocation2 + $0x2]] }
  0x53   : > { %v1364_v55 = vld [vmem:[%s1715_s29 + $0x70] sm:$0xff]  ;;  %v1366_v56 = vld [vmem:[%s1715_s29 + $0x80] sm:$0xff]  ;;  %v544_v58 = vsub.f32 %v500_v48, %v1360_v52  ;;  %v550_v59 = vsub.f32 %v1352_v49, %v1362_v53  ;;  %v1731_v61 = vsub.f32 %v1360_v52, %v1356_v50  ;;  %v1737_v2 = vsub.f32 %v1362_v53, %v1358_v51  ;;  %v1361_v14 = vld [vmem:[%s1715_s29 + $0x58] sm:$0xff]  ;;  %s1799_s9 = sld [smem:[#allocation2 + $0x82]]  ;;  %s1807_s10 = sld [smem:[#allocation2 + $0x101]] }
  0x54   : > { %v1729_v57 = vld [vmem:[%s1715_s29 + $0x90] sm:$0xff]  ;;  %v546_v63 = vsub.f32 %v1352_v49, %v1366_v56  ;;  %v552_v0 = vsub.f32 %v500_v48, %v1364_v55  ;;  %v1739_v3 = vsub.f32 %v1364_v55, %v1356_v50  ;;  %v1745_v8 = vsub.f32 %v1366_v56, %v1358_v51  ;;  %v1752_v15 = vld [vmem:[%s1715_s29 + $0x68] sm:$0xff]  ;;  %v1755_v16 = vld [vmem:[%s1715_s29 + $0x78] sm:$0xff]  ;;  %s1818_s11 = sld [smem:[#allocation2 + $0x102]]  ;;  %s1897_s12 = scalar_lea.vmem [#allocation6], %s1713_s28 }
  0x55   : > { %v1372_v62 = vld [vmem:[%s1715_s29 + $0xb0] sm:$0xff]  ;;  %v576_v4 = vmul.f32 %v562_v54, %v550_v59  ;;  %v578_v5 = vmul.f32 %v566_v60, %v544_v58  ;;  %v1758_v18 = vld [vmem:[%s1715_s29 + $0x88] sm:$0xff]  ;;  %v545_v19 = vsub.f32 %v501_v1, %v1361_v14  ;;  %v551_v20 = vsub.f32 %v1353_v6, %v1752_v15  ;;  %v1779_v43 = vld [vmem:[%s1715_s29 + $0xe0] sm:$0xff]  ;;  %s2124_s17 = scalar_lea.vmem [#allocation7], %s1713_s28  ;;  %p2343_p4 = scmp.ne.s32.totalorder %s2341_s24, 0 }
  0x56   : > { %v1748_v9 = vsub.f32 %v1372_v62, %v1729_v57  ;;  %v548_v10 = vmul.f32 %v546_v63, %v544_v58  ;;  %v554_v11 = vmul.f32 %v552_v0, %v550_v59  ;;  %v564_v12 = vmul.f32 %v562_v54, %v546_v63  ;;  %v1763_v24 = vld [vmem:[%s1715_s29 + $0x48] sm:$0xff]  ;;  %v1776_v39 = vld [vmem:[%s1715_s29 + $0xd0] sm:$0xff]  ;;  %v1794_v53 = vld [vmem:[%s1715_s29 + $0xa0] sm:$0xff]  ;;  %s1436_s27 = sshll.u32 (%p2343_p4), %s1570_s18, 4 }
  0x57   : > { %v568_v13 = vmul.f32 %v566_v60, %v552_v0  ;;  %v580_v17 = vsub.f32 %v576_v4, %v578_v5  ;;  %v553_v21 = vsub.f32 %v501_v1, %v1755_v16  ;;  %v547_v25 = vsub.f32 %v1353_v6, %v1758_v18  ;;  %v1797_v54 = vld [vmem:[%s1715_s29 + $0xc0] sm:$0xff]  ;;  %v1369_v63 = vld [vmem:[%s1715_s29 + $0x98] sm:$0xff] }
  0x58   : > { %v556_v22 = vsub.f32 %v548_v10, %v554_v11  ;;  %v563_v26 = vsub.f32 %v501_v1, %v1743_v7  ;;  %v567_v29 = vsub.f32 %v1353_v6, %v1763_v24  ;;  %v1771_v30 = vsub.f32 %v1361_v14, %v1743_v7  ;;  %v1810_v10 = vld [vmem:[%s1715_s29 + $0xa8] sm:$0xff]  ;;  %v1354_v11 = vld [vmem:[%s1715_s29 + $0x20] sm:$0xff]  ;;  %s779_s13 = smul.f32 %s1773_s5, %s1773_s5 }
  0x59   : > { %v570_v23 = vsub.f32 %v564_v12, %v568_v13  ;;  %v582_v27 = vand.u32 2147483647, %v580_v17  ;;  %v555_v28 = vmul.f32 %v553_v21, %v551_v20  ;;  %v549_v33 = vmul.f32 %v547_v25, %v545_v19  ;;  %v1355_v13 = vld [vmem:[%s1715_s29 + $0x28] sm:$0xff]  ;;  %v1373_v17 = vld [vmem:[%s1715_s29 + $0xb8] sm:$0xff]  ;;  %s789_s14 = smul.f32 %s1807_s10, %s1773_s5 }
  0x5a   : > { %v558_v31 = vand.u32 2147483647, %v556_v22  ;;  %v565_v34 = vmul.f32 %v563_v26, %v547_v25  ;;  %v569_v36 = vmul.f32 %v567_v29, %v553_v21  ;;  %v577_v37 = vmul.f32 %v563_v26, %v551_v20  ;;  %s799_s20 = smul.f32 %s1818_s11, %s1773_s5 }
  0x5b   : > { %v572_v32 = vand.u32 2147483647, %v570_v23  ;;  %v584_v35 = vmul.f32 0.5, %v582_v27  ;;  %v579_v38 = vmul.f32 %v567_v29, %v545_v19  ;;  %v557_v42 = vsub.f32 %v549_v33, %v555_v28  ;;  %v1377_v19 = vld [vmem:[%s1715_s29 + $0xd8] sm:$0xff]  ;;  %v1821_v27 = vld [vmem:[%s1715_s29 + $0xc8] sm:$0xff]  ;;  %s817_s21 = smul.f32 %s1807_s10, %s1807_s10 }
  0x5c   : > { %v560_v40 = vmul.f32 0.5, %v558_v31  ;;  %v1782_v44 = vstv %s1735_s15  ;;  %v571_v46 = vsub.f32 %v565_v34, %v569_v36  ;;  %v1805_v1 = vstv %s1767_s25  ;;  %v1824_v28 = vld [vmem:[%s1715_s29 + $0xe8] sm:$0xff]  ;;  %s827_s26 = smul.f32 %s1818_s11, %s1807_s10 }
  0x5d   : > { %v574_v41 = vmul.f32 0.5, %v572_v32  ;;  %v598_v45 = vmul.f32 %v1776_v39, %v584_v35  ;;  %v581_v47 = vsub.f32 %v577_v37, %v579_v38  ;;  %v610_v48 = vmul.f32 %v1779_v43, %v584_v35  ;;  %s853_s23 = smul.f32 %s1818_s11, %s1818_s11 }
  0x5e   : > { %v592_v50 = vmul.f32 %v1729_v57, %v560_v40  ;;  %v559_v52 = vand.u32 2147483647, %v557_v42  ;;  %v573_v55 = vand.u32 2147483647, %v571_v46  ;;  %v604_v58 = vmul.f32 %v1794_v53, %v560_v40 }
  0x5f   : > { %v586_v49 = vadd.f32 %v574_v41, %v560_v40  ;;  %v594_v51 = vmul.f32 %v1372_v62, %v574_v41  ;;  %v583_v56 = vand.u32 2147483647, %v581_v47  ;;  %v606_v59 = vmul.f32 %v1797_v54, %v574_v41 }
  0x60   : > { %v561_v0 = vmul.f32 0.5, %v559_v52  ;;  %v575_v4 = vmul.f32 0.5, %v573_v55  ;;  %v629_v12 = vstv %s1773_s5  ;;  %v1833_v36 = vstv %s1784_s6 }
  0x61   : > { %v588_v60 = vadd.f32 %v586_v49, %v584_v35  ;;  %v596_v62 = vadd.f32 %v594_v51, %v592_v50  ;;  %v585_v5 = vmul.f32 0.5, %v583_v56  ;;  %v608_v6 = vadd.f32 %v606_v59, %v604_v58 }
  0x62   : > { %v593_v20 = vmul.f32 %v1369_v63, %v561_v0  ;;  %v605_v21 = vmul.f32 %v1810_v10, %v561_v0  ;;  %v587_v22 = vadd.f32 %v575_v4, %v561_v0  ;;  %v595_v23 = vmul.f32 %v1373_v17, %v575_v4 }
  0x63   : > { %1477 = vrcp.f32 %v588_v60  ;;  %v600_v14 = vadd.f32 %v598_v45, %v596_v62  ;;  %v599_v25 = vmul.f32 %v1377_v19, %v585_v5  ;;  %v612_v26 = vadd.f32 %v610_v48, %v608_v6 }
  0x64   : > { %v607_v29 = vmul.f32 %v1821_v27, %v575_v4  ;;  %v611_v31 = vmul.f32 %v1824_v28, %v585_v5  ;;  %v1828_v32 = vmul.f32 %v1354_v11, %v629_v12  ;;  %v1830_v33 = vmul.f32 %v1355_v13, %v629_v12 }
  0x65   : > { %v589_v34 = vadd.f32 %v587_v22, %v585_v5  ;;  %v597_v35 = vadd.f32 %v595_v23, %v593_v20  ;;  %v1836_v37 = vstv %s1788_s7  ;;  %v645_v40 = vstv %s1807_s10 }
  0x66   : > { %v609_v38 = vadd.f32 %v607_v29, %v605_v21  ;;  %v1840_v41 = vstv %s1790_s8  ;;  %v1843_v42 = vstv %s1799_s9  ;;  %v646_v46 = vmul.f32 %v1354_v11, %v645_v40 }
  0x67   : > { %1479 = vrcp.f32 %v589_v34  ;;  %v601_v45 = vadd.f32 %v599_v25, %v597_v35  ;;  %v1845_v47 = vmul.f32 %v1355_v13, %v645_v40  ;;  %v661_v49 = vstv %s1818_s11 }
  0x68   : > { %v613_v48 = vadd.f32 %v611_v31, %v609_v38  ;;  %v681_v50 = vsub.f32 %v1776_v39, %v1729_v57  ;;  %v685_v51 = vmul.f32 %v1745_v8, %v1731_v61  ;;  %v662_v52 = vmul.f32 %v1354_v11, %v661_v49 }
  0x69   : > { %v1852_v55 = vmul.f32 %v1355_v13, %v661_v49  ;;  %v687_v56 = vmul.f32 %v1739_v3, %v1737_v2  ;;  %v1858_v58 = vmul.f32 %v1748_v9, %v1745_v8  ;;  %v1865_v60 = vsub.f32 %v1752_v15, %v1763_v24 }
  0x6a   : > { %v1861_v59 = vmul.f32 %v681_v50, %v1737_v2  ;;  %v1869_v57 = vsub.f32 %v1755_v16, %v1743_v7  ;;  %v1873_v39 = vsub.f32 %v1758_v18, %v1763_v24  ;;  %v678_v0 = vsub.f32 %v1373_v17, %v1369_v63 }
  0x6b   : > { %v689_v62 = vsub.f32 %v685_v51, %v687_v56  ;;  %v682_v4 = vsub.f32 %v1377_v19, %v1369_v63  ;;  %v1876_v5 = vmul.f32 %v681_v50, %v1731_v61  ;;  %v703_v16 = vmul.f32 %v1748_v9, %v1739_v3 }
  0x6c   : > { %v697_v15 = vsub.f32 %v1858_v58, %v1861_v59  ;;  %v686_v11 = vmul.f32 %v1873_v39, %v1771_v30  ;;  %v688_v7 = vmul.f32 %v1869_v57, %v1865_v60  ;;  %v1887_v63 = vmul.f32 %v678_v0, %v1873_v39 }
  0x6d   : > { %v1478_v6 = vpop.eup %1477  ;;  %1481 = vrcp.f32 %v689_v62  ;;  %v1890_v13 = vmul.f32 %v682_v4, %v1865_v60  ;;  %v705_v17 = vsub.f32 %v1876_v5, %v703_v16  ;;  %v1894_v19 = vmul.f32 %v682_v4, %v1771_v30 }
  0x6e   : > { %v602_v18 = vmul.f32 %v1478_v6, %v600_v14  ;;  %v614_v24 = vmul.f32 %v1478_v6, %v612_v26  ;;  %v690_v12 = vsub.f32 %v686_v11, %v688_v7  ;;  %v704_v34 = vmul.f32 %v678_v0, %v1869_v57 }
  0x6f   : > { %v698_v25 = vsub.f32 %v1887_v63, %v1890_v13  ;;  %v679_v35 = vsub.f32 %v1797_v54, %v1794_v53  ;;  %v683_v50 = vsub.f32 %v1779_v43, %v1794_v53  ;;  %v680_v4 = vsub.f32 %v1821_v27, %v1810_v10 }
  0x70   : > { %616 = vst [vmem:[%s1897_s12] sm:$0xff] %v602_v18  ;;  %1380 = vst [vmem:[%s1897_s12 + $0x10] sm:$0xff] %v614_v24  ;;  %v622_v9 = vmul.f32 %v1782_v44, %v602_v18  ;;  %v625_v14 = vmul.f32 %v1805_v1, %v614_v24  ;;  %v638_v20 = vmul.f32 %v1833_v36, %v602_v18  ;;  %1483 = vrcp.f32 %v690_v12 }
  0x71   : > { %v641_v21 = vmul.f32 %v1836_v37, %v614_v24  ;;  %v654_v22 = vmul.f32 %v1840_v41, %v602_v18  ;;  %v657_v23 = vmul.f32 %v1843_v42, %v614_v24  ;;  %v1480_v26 = vpop.eup %1479  ;;  %v706_v58 = vsub.f32 %v1894_v19, %v704_v34 }
  0x72   : > { %v627_v29 = vadd.f32 %v625_v14, %v622_v9  ;;  %v603_v38 = vmul.f32 %v1480_v26, %v601_v45  ;;  %v615_v40 = vmul.f32 %v1480_v26, %v613_v48  ;;  %v709_v59 = vmul.f32 %v679_v35, %v1745_v8 }
  0x73   : > { %v643_v31 = vadd.f32 %v641_v21, %v638_v20  ;;  %v659_v49 = vadd.f32 %v657_v23, %v654_v22  ;;  %v711_v8 = vmul.f32 %v683_v50, %v1737_v2  ;;  %v684_v5 = vsub.f32 %v1824_v28, %v1810_v10 }
  0x74   : > { %v632_v51 = vadd.f32 %v1828_v32, %v627_v29  ;;  %617 = vst [vmem:[%s1897_s12 + $0x8] sm:$0xff] %v603_v38  ;;  %1381 = vst [vmem:[%s1897_s12 + $0x18] sm:$0xff] %v615_v40  ;;  %v623_v62 = vmul.f32 %v1782_v44, %v603_v38  ;;  %v626_v54 = vmul.f32 %v1805_v1, %v615_v40 }
  0x75   : > { %v648_v56 = vadd.f32 %v646_v46, %v643_v31  ;;  %v639_v45 = vmul.f32 %v1833_v36, %v603_v38  ;;  %v642_v48 = vmul.f32 %v1836_v37, %v615_v40  ;;  %v664_v43 = vadd.f32 %v662_v52, %v659_v49 }
  0x76   : > { %1382 = vst [vmem:[%s1897_s12 + $0x20] sm:$0xff] %v632_v51  ;;  %v655_v53 = vmul.f32 %v1840_v41, %v603_v38  ;;  %v658_v32 = vmul.f32 %v1843_v42, %v615_v40  ;;  %v628_v46 = vadd.f32 %v626_v54, %v623_v62  ;;  %v713_v11 = vsub.f32 %v709_v59, %v711_v8 }
  0x77   : > { %1384 = vst [vmem:[%s1897_s12 + $0x30] sm:$0xff] %v648_v56  ;;  %v644_v0 = vadd.f32 %v642_v48, %v639_v45  ;;  %v1482_v6 = vpop.eup %1481  ;;  %1386 = vst [vmem:[%s1897_s12 + $0x40] sm:$0xff] %v664_v43  ;;  %v717_v7 = vmul.f32 %v683_v50, %v1731_v61  ;;  %v719_v16 = vmul.f32 %v679_v35, %v1739_v3  ;;  %v780_v62 = vstv %s779_s13 }
  0x78   : > { %v660_v52 = vadd.f32 %v658_v32, %v655_v53  ;;  %v633_v2 = vadd.f32 %v1830_v33, %v628_v46  ;;  %v699_v27 = vmul.f32 %v1482_v6, %v697_v15  ;;  %v707_v24 = vmul.f32 %v1482_v6, %v705_v17 }
  0x79   : > { %v649_v18 = vadd.f32 %v1845_v47, %v644_v0  ;;  %v715_v28 = vmul.f32 %v1482_v6, %v713_v11  ;;  %v710_v63 = vmul.f32 %v680_v4, %v1873_v39  ;;  %v712_v12 = vmul.f32 %v684_v5, %v1865_v60 }
  0x7a   : > { %v665_v10 = vadd.f32 %v1852_v55, %v660_v52  ;;  %v1484_v13 = vpop.eup %1483  ;;  %1383 = vst [vmem:[%s1897_s12 + $0x28] sm:$0xff] %v633_v2  ;;  %1388 = vst [vmem:[%s1897_s12 + $0x50] sm:$0xff] %v699_v27  ;;  %v737_v61 = vmul.f32 %v699_v27, %v1782_v44  ;;  %v743_v3 = vmul.f32 %v699_v27, %v1833_v36  ;;  %v1989_v48 = vstv %s789_s14 }
  0x7b   : > { %1385 = vst [vmem:[%s1897_s12 + $0x38] sm:$0xff] %v649_v18  ;;  %v749_v33 = vmul.f32 %v699_v27, %v1840_v41  ;;  %1390 = vst [vmem:[%s1897_s12 + $0x60] sm:$0xff] %v707_v24  ;;  %v739_v47 = vmul.f32 %v707_v24, %v1805_v1  ;;  %v700_v55 = vmul.f32 %v1484_v13, %v698_v25  ;;  %v1997_v0 = vstv %s799_s20 }
  0x7c   : > { %1387 = vst [vmem:[%s1897_s12 + $0x48] sm:$0xff] %v665_v10  ;;  %v745_v60 = vmul.f32 %v707_v24, %v1836_v37  ;;  %v751_v39 = vmul.f32 %v707_v24, %v1843_v42  ;;  %v708_v15 = vmul.f32 %v1484_v13, %v706_v58  ;;  %1392 = vst [vmem:[%s1897_s12 + $0x70] sm:$0xff] %v715_v28 }
  0x7d   : > { %v1952_v17 = vadd.f32 %v739_v47, %v737_v61  ;;  %v755_v19 = vmul.f32 %v715_v28, %v1782_v44  ;;  %v761_v9 = vmul.f32 %v715_v28, %v1833_v36  ;;  %v767_v14 = vmul.f32 %v715_v28, %v1840_v41  ;;  %1389 = vst [vmem:[%s1897_s12 + $0x58] sm:$0xff] %v700_v55 }
  0x7e   : > { %v738_v20 = vmul.f32 %v700_v55, %v1782_v44  ;;  %v744_v21 = vmul.f32 %v700_v55, %v1833_v36  ;;  %v750_v22 = vmul.f32 %v700_v55, %v1840_v41  ;;  %v1961_v23 = vadd.f32 %v745_v60, %v743_v3  ;;  %1391 = vst [vmem:[%s1897_s12 + $0x68] sm:$0xff] %v708_v15 }
  0x7f   : > { %v740_v25 = vmul.f32 %v708_v15, %v1805_v1  ;;  %v746_v26 = vmul.f32 %v708_v15, %v1836_v37  ;;  %v752_v29 = vmul.f32 %v708_v15, %v1843_v42  ;;  %v714_v31 = vsub.f32 %v710_v63, %v712_v12  ;;  %v2041_v15 = vld [vmem:[%s1718_s30 + $0x30] sm:$0xff] }
  0x80   : > { %v721_v34 = vsub.f32 %v717_v7, %v719_v16  ;;  %v718_v35 = vmul.f32 %v684_v5, %v1771_v30  ;;  %v720_v38 = vmul.f32 %v680_v4, %v1869_v57  ;;  %v1973_v40 = vadd.f32 %v751_v39, %v749_v33  ;;  %v2038_v39 = vld [vmem:[%s1718_s30] sm:$0xff] }
  0x81   : > { %v1975_v49 = vadd.f32 %v740_v25, %v738_v20  ;;  %v1977_v50 = vadd.f32 %v746_v26, %v744_v21  ;;  %v716_v51 = vmul.f32 %v1484_v13, %v714_v31  ;;  %v773_v56 = vmul.f32 %v1952_v17, %v1782_v44  ;;  %v2055_v31 = vld [vmem:[%s1718_s30 + $0x40] sm:$0xff] }
  0x82   : > { %v723_v58 = vmul.f32 %v1482_v6, %v721_v34  ;;  %v722_v59 = vsub.f32 %v718_v35, %v720_v38  ;;  %v783_v30 = vmul.f32 %v1961_v23, %v1782_v44  ;;  %v793_v46 = vmul.f32 %v1973_v40, %v1782_v44  ;;  %v2059_v35 = vld [vmem:[%s1718_s30 + $0x8] sm:$0xff]  ;;  %v2062_v38 = vld [vmem:[%s1718_s30 + $0x38] sm:$0xff] }
  0x83   : > { %1393 = vst [vmem:[%s1897_s12 + $0x78] sm:$0xff] %v716_v51  ;;  %v756_v57 = vmul.f32 %v716_v51, %v1782_v44  ;;  %v762_v54 = vmul.f32 %v716_v51, %v1833_v36  ;;  %v768_v45 = vmul.f32 %v716_v51, %v1840_v41  ;;  %v1999_v4 = vadd.f32 %v752_v29, %v750_v22  ;;  %v2049_v22 = vld [vmem:[%s1718_s30 + $0x60] sm:$0xff]  ;;  %v2052_v29 = vld [vmem:[%s1718_s30 + $0x10] sm:$0xff] }
  0x84   : > { %1394 = vst [vmem:[%s1897_s12 + $0x80] sm:$0xff] %v723_v58  ;;  %v757_v43 = vmul.f32 %v723_v58, %v1805_v1  ;;  %v763_v53 = vmul.f32 %v723_v58, %v1836_v37  ;;  %v769_v32 = vmul.f32 %v723_v58, %v1843_v42  ;;  %v724_v8 = vmul.f32 %v1484_v13, %v722_v59  ;;  %v2065_v51 = vld [vmem:[%s1718_s30 + $0x70] sm:$0xff] }
  0x85   : > { %v774_v5 = vmul.f32 %v1975_v49, %v1782_v44  ;;  %v784_v18 = vmul.f32 %v1977_v50, %v1782_v44  ;;  %v794_v27 = vmul.f32 %v1999_v4, %v1782_v44  ;;  %v803_v61 = vmul.f32 %v1952_v17, %v1833_v36 }
  0x86   : > { %v2003_v6 = vadd.f32 %v757_v43, %v755_v19  ;;  %v2005_v52 = vadd.f32 %v763_v53, %v761_v9  ;;  %1395 = vst [vmem:[%s1897_s12 + $0x88] sm:$0xff] %v724_v8  ;;  %v758_v11 = vmul.f32 %v724_v8, %v1805_v1  ;;  %v764_v7 = vmul.f32 %v724_v8, %v1836_v37  ;;  %v2079_v43 = vld [vmem:[%s1718_s30 + $0x18] sm:$0xff]  ;;  %v2082_v53 = vld [vmem:[%s1718_s30 + $0x48] sm:$0xff] }
  0x87   : > { %v770_v16 = vmul.f32 %v724_v8, %v1843_v42  ;;  %v2011_v2 = vadd.f32 %v769_v32, %v767_v14  ;;  %v811_v14 = vmul.f32 %v1961_v23, %v1833_v36 }
  0x88   : > { %v2017_v24 = vadd.f32 %v758_v11, %v756_v57  ;;  %v2019_v10 = vadd.f32 %v764_v7, %v762_v54  ;;  %v775_v28 = vmul.f32 %v2003_v6, %v1805_v1  ;;  %v785_v63 = vmul.f32 %v2005_v52, %v1805_v1  ;;  %v2092_v11 = vld [vmem:[%s1718_s30 + $0x20] sm:$0xff] }
  0x89   : > { %v795_v12 = vmul.f32 %v2011_v2, %v1805_v1  ;;  %v2027_v13 = vadd.f32 %v770_v16, %v768_v45  ;;  %v805_v44 = vmul.f32 %v2003_v6, %v1836_v37  ;;  %v813_v58 = vmul.f32 %v2005_v52, %v1836_v37  ;;  %v2076_v45 = vld [vmem:[%s1718_s30 + $0x68] sm:$0xff] }
  0x8a   : > { %v777_v3 = vadd.f32 %v775_v28, %v773_v56  ;;  %v787_v33 = vadd.f32 %v785_v63, %v783_v30  ;;  %v776_v47 = vmul.f32 %v2017_v24, %v1805_v1  ;;  %v786_v55 = vmul.f32 %v2019_v10, %v1805_v1  ;;  %v2098_v28 = vld [vmem:[%s1718_s30 + $0x50] sm:$0xff]  ;;  %v2101_v63 = vld [vmem:[%s1718_s30 + $0x80] sm:$0xff] }
  0x8b   : > { %v797_v60 = vadd.f32 %v795_v12, %v793_v46  ;;  %v796_v19 = vmul.f32 %v2027_v13, %v1805_v1  ;;  %v807_v9 = vadd.f32 %v805_v44, %v803_v61 }
  0x8c   : > { %v781_v20 = vadd.f32 %v780_v62, %v777_v3  ;;  %v791_v21 = vadd.f32 %v1989_v48, %v787_v33  ;;  %v778_v25 = vadd.f32 %v776_v47, %v774_v5  ;;  %v788_v26 = vadd.f32 %v786_v55, %v784_v18  ;;  %v2089_v5 = vld [vmem:[%s1718_s30 + $0x78] sm:$0xff]  ;;  %v2107_v33 = vld [vmem:[%s1718_s30 + $0x28] sm:$0xff] }
  0x8d   : > { %v801_v1 = vadd.f32 %v1997_v0, %v797_v60  ;;  %v798_v34 = vadd.f32 %v796_v19, %v794_v27  ;;  %v2068_v56 = vadd.f32 %v807_v9, %v1989_v48  ;;  %v2110_v47 = vld [vmem:[%s1718_s30 + $0x58] sm:$0xff]  ;;  %v2113_v55 = vld [vmem:[%s1718_s30 + $0x88] sm:$0xff]  ;;  %s2246_s30 = scalar_lea.vmem (%p2343_p4), %s2338_s3, %s1436_s27 }
  0x8e   : > { %v883_v59 = vmul.f32 %v2038_v39, %v781_v20  ;;  %v885_v30 = vmul.f32 %v2041_v15, %v791_v21  ;;  %v782_v57 = vadd.f32 %v780_v62, %v778_v25  ;;  %v792_v54 = vadd.f32 %v1989_v48, %v788_v26 }
  0x8f   : > { %v889_v32 = vmul.f32 %v2049_v22, %v801_v1  ;;  %v802_v8 = vadd.f32 %v1997_v0, %v798_v34  ;;  %v895_v46 = vmul.f32 %v2052_v29, %v781_v20  ;;  %v897_v62 = vmul.f32 %v2055_v31, %v791_v21 }
  0x90   : > { %v887_v7 = vadd.f32 %v885_v30, %v883_v59  ;;  %v884_v16 = vmul.f32 %v2059_v35, %v782_v57  ;;  %v886_v18 = vmul.f32 %v2062_v38, %v792_v54  ;;  %v901_v27 = vmul.f32 %v2065_v51, %v801_v1 }
  0x91   : > { %v890_v12 = vmul.f32 %v2076_v45, %v802_v8  ;;  %v899_v61 = vadd.f32 %v897_v62, %v895_v46  ;;  %v896_v44 = vmul.f32 %v2079_v43, %v782_v57  ;;  %v898_v3 = vmul.f32 %v2082_v53, %v792_v54 }
  0x92   : > { %v891_v60 = vadd.f32 %v889_v32, %v887_v7  ;;  %v888_v19 = vadd.f32 %v886_v18, %v884_v16  ;;  %v902_v9 = vmul.f32 %v2089_v5, %v802_v8  ;;  %v908_v25 = vmul.f32 %v2092_v11, %v781_v20 }
  0x93   : > { %v903_v26 = vadd.f32 %v901_v27, %v899_v61  ;;  %v900_v34 = vadd.f32 %v898_v3, %v896_v44  ;;  %v910_v59 = vmul.f32 %v2098_v28, %v791_v21  ;;  %v914_v30 = vmul.f32 %v2101_v63, %v801_v1 }
  0x94   : > { %893 = vst [vmem:[%s2124_s17] sm:$0xff] %v891_v60  ;;  %v892_v32 = vadd.f32 %v890_v12, %v888_v19  ;;  %v909_v46 = vmul.f32 %v2107_v33, %v782_v57  ;;  %v911_v62 = vmul.f32 %v2110_v47, %v792_v54  ;;  %v915_v20 = vmul.f32 %v2113_v55, %v802_v8 }
  0x95   : > { %1412 = vst [vmem:[%s2124_s17 + $0x10] sm:$0xff] %v903_v26  ;;  %v904_v7 = vadd.f32 %v902_v9, %v900_v34  ;;  %v912_v16 = vadd.f32 %v910_v59, %v908_v25  ;;  %v815_v21 = vadd.f32 %v813_v58, %v811_v14  ;;  %v818_v1 = vstv %s817_s21 }
  0x96   : > { %894 = vst [vmem:[%s2124_s17 + $0x8] sm:$0xff] %v892_v32  ;;  %v913_v18 = vadd.f32 %v911_v62, %v909_v46  ;;  %v821_v27 = vmul.f32 %v1973_v40, %v1833_v36  ;;  %v823_v12 = vmul.f32 %v2011_v2, %v1836_v37  ;;  %v2136_v57 = vstv %s827_s26 }
  0x97   : > { %1413 = vst [vmem:[%s2124_s17 + $0x18] sm:$0xff] %v904_v7  ;;  %v916_v54 = vadd.f32 %v914_v30, %v912_v16  ;;  %v819_v8 = vadd.f32 %v818_v1, %v815_v21  ;;  %v921_v61 = vmul.f32 %v2038_v39, %v2068_v56  ;;  %v804_v14 = vmul.f32 %v1975_v49, %v1833_v36 }
  0x98   : > { %v917_v58 = vadd.f32 %v915_v20, %v913_v18  ;;  %v825_v44 = vadd.f32 %v823_v12, %v821_v27  ;;  %v806_v3 = vmul.f32 %v2017_v24, %v1836_v37  ;;  %v812_v60 = vmul.f32 %v1977_v50, %v1833_v36 }
  0x99   : > { %1414 = vst [vmem:[%s2124_s17 + $0x20] sm:$0xff] %v916_v54  ;;  %v923_v19 = vmul.f32 %v2041_v15, %v819_v8  ;;  %v814_v9 = vmul.f32 %v2019_v10, %v1836_v37  ;;  %v822_v25 = vmul.f32 %v1999_v4, %v1833_v36  ;;  %v824_v26 = vmul.f32 %v2027_v13, %v1836_v37 }
  0x9a   : > { %1415 = vst [vmem:[%s2124_s17 + $0x28] sm:$0xff] %v917_v58  ;;  %v829_v34 = vadd.f32 %v2136_v57, %v825_v44  ;;  %v808_v59 = vadd.f32 %v806_v3, %v804_v14  ;;  %v934_v30 = vmul.f32 %v2052_v29, %v2068_v56  ;;  %v936_v32 = vmul.f32 %v2055_v31, %v819_v8 }
  0x9b   : > { %v925_v46 = vadd.f32 %v923_v19, %v921_v61  ;;  %v816_v62 = vadd.f32 %v814_v9, %v812_v60  ;;  %v826_v20 = vadd.f32 %v824_v26, %v822_v25  ;;  %v947_v7 = vmul.f32 %v2092_v11, %v2068_v56 }
  0x9c   : > { %v927_v36 = vmul.f32 %v2049_v22, %v829_v34  ;;  %v810_v37 = vadd.f32 %v808_v59, %v1989_v48  ;;  %v938_v16 = vadd.f32 %v936_v32, %v934_v30  ;;  %v940_v21 = vmul.f32 %v2065_v51, %v829_v34 }
  0x9d   : > { %v820_v18 = vadd.f32 %v818_v1, %v816_v62  ;;  %v830_v27 = vadd.f32 %v2136_v57, %v826_v20  ;;  %v949_v12 = vmul.f32 %v2098_v28, %v819_v8  ;;  %v953_v54 = vmul.f32 %v2101_v63, %v829_v34 }
  0x9e   : > { %v929_v61 = vadd.f32 %v927_v36, %v925_v46  ;;  %v922_v56 = vmul.f32 %v2059_v35, %v810_v37  ;;  %v942_v14 = vadd.f32 %v940_v21, %v938_v16  ;;  %v935_v58 = vmul.f32 %v2079_v43, %v810_v37 }
  0x9f   : > { %v924_v48 = vmul.f32 %v2062_v38, %v820_v18  ;;  %v928_v44 = vmul.f32 %v2076_v45, %v830_v27  ;;  %v937_v3 = vmul.f32 %v2082_v53, %v820_v18  ;;  %v941_v1 = vmul.f32 %v2089_v5, %v830_v27 }
  0xa0   : > { %1416 = vst [vmem:[%s2124_s17 + $0x30] sm:$0xff] %v929_v61  ;;  %1418 = vst [vmem:[%s2124_s17 + $0x40] sm:$0xff] %v942_v14  ;;  %v951_v8 = vadd.f32 %v949_v12, %v947_v7  ;;  %v948_v60 = vmul.f32 %v2107_v33, %v810_v37  ;;  %v950_v19 = vmul.f32 %v2110_v47, %v820_v18  ;;  %v854_v21 = vstv %s853_s23 }
  0xa1   : > { %v954_v9 = vmul.f32 %v2113_v55, %v830_v27  ;;  %v926_v25 = vadd.f32 %v924_v48, %v922_v56  ;;  %v939_v26 = vadd.f32 %v937_v3, %v935_v58  ;;  %v831_v34 = vmul.f32 %v1952_v17, %v1840_v41 }
  0xa2   : > { %v833_v59 = vmul.f32 %v2003_v6, %v1843_v42  ;;  %v955_v30 = vadd.f32 %v953_v54, %v951_v8  ;;  %v952_v32 = vadd.f32 %v950_v19, %v948_v60  ;;  %v839_v46 = vmul.f32 %v1961_v23, %v1840_v41 }
  0xa3   : > { %v841_v62 = vmul.f32 %v2005_v52, %v1843_v42  ;;  %v930_v20 = vadd.f32 %v928_v44, %v926_v25  ;;  %v943_v7 = vadd.f32 %v941_v1, %v939_v26  ;;  %v847_v37 = vmul.f32 %v1973_v40, %v1840_v41 }
  0xa4   : > { %v835_v36 = vadd.f32 %v833_v59, %v831_v34  ;;  %1420 = vst [vmem:[%s2124_s17 + $0x50] sm:$0xff] %v955_v30  ;;  %v956_v17 = vadd.f32 %v954_v9, %v952_v32  ;;  %v849_v6 = vmul.f32 %v2011_v2, %v1843_v42  ;;  %v832_v52 = vmul.f32 %v1975_v49, %v1840_v41  ;;  %v1082_v34 = vld [vmem:[%s1897_s12 + $0x20] sm:$0xff] (%p2343_p4)  ;;  %v1084_v59 = vld [vmem:[%s1897_s12 + $0x28] sm:$0xff] (%p2343_p4)  ;;  %v1086_v30 = vld [vmem:[%s1897_s12 + $0x30] sm:$0xff] (%p2343_p4) }
  0xa5   : > { %v843_v16 = vadd.f32 %v841_v62, %v839_v46  ;;  %1417 = vst [vmem:[%s2124_s17 + $0x38] sm:$0xff] %v930_v20  ;;  %1419 = vst [vmem:[%s2124_s17 + $0x48] sm:$0xff] %v943_v7  ;;  %v834_v18 = vmul.f32 %v2017_v24, %v1843_v42  ;;  %v840_v40 = vmul.f32 %v1977_v50, %v1840_v41  ;;  %v1088_v32 = vld [vmem:[%s1897_s12 + $0x38] sm:$0xff] (%p2343_p4)  ;;  %v1090_v46 = vld [vmem:[%s1897_s12 + $0x40] sm:$0xff] (%p2343_p4) }
  0xa6   : > { %v837_v23 = vadd.f32 %v835_v36, %v1997_v0  ;;  %1421 = vst [vmem:[%s2124_s17 + $0x58] sm:$0xff] %v956_v17  ;;  %v851_v12 = vadd.f32 %v849_v6, %v847_v37  ;;  %v842_v2 = vmul.f32 %v2019_v10, %v1843_v42  ;;  %v848_v54 = vmul.f32 %v1999_v4, %v1840_v41  ;;  %v1092_v62 = vld [vmem:[%s1897_s12 + $0x48] sm:$0xff] (%p2343_p4)  ;;  %v1094_v20 = vld [vmem:[%s1897_s12 + $0x50] sm:$0xff] (%p2343_p4)  ;;  %v1096_v7 = vld [vmem:[%s1897_s12 + $0x58] sm:$0xff] (%p2343_p4) }
  0xa7   : > { %v845_v27 = vadd.f32 %v843_v16, %v2136_v57  ;;  %v836_v56 = vadd.f32 %v834_v18, %v832_v52  ;;  %v850_v49 = vmul.f32 %v2027_v13, %v1843_v42  ;;  %1083 = vst [vmem:[%s2246_s30 + $0x40] sm:$0xff] (%p2343_p4), %v1082_v34  ;;  %1085 = vst [vmem:[%s2246_s30 + $0x48] sm:$0xff] (%p2343_p4), %v1084_v59  ;;  %v1098_v36 = vld [vmem:[%s1897_s12 + $0x60] sm:$0xff] (%p2343_p4)  ;;  %v1100_v37 = vld [vmem:[%s1897_s12 + $0x68] sm:$0xff] (%p2343_p4) }
  0xa8   : > { %v960_v61 = vmul.f32 %v2038_v39, %v837_v23  ;;  %v973_v24 = vmul.f32 %v2052_v29, %v837_v23  ;;  %v855_v14 = vadd.f32 %v854_v21, %v851_v12  ;;  %v844_v58 = vadd.f32 %v842_v2, %v840_v40  ;;  %1087 = vst [vmem:[%s2246_s30 + $0x60] sm:$0xff] (%p2343_p4), %v1086_v30  ;;  %v1102_v17 = vld [vmem:[%s1897_s12 + $0x70] sm:$0xff] (%p2343_p4)  ;;  %v1104_v16 = vld [vmem:[%s1897_s12 + $0x78] sm:$0xff] (%p2343_p4)  ;;  %v1106_v6 = vld [vmem:[%s1897_s12 + $0x80] sm:$0xff] (%p2343_p4) }
  0xa9   : > { %v962_v50 = vmul.f32 %v2041_v15, %v845_v27  ;;  %v975_v48 = vmul.f32 %v2055_v31, %v845_v27  ;;  %v838_v44 = vadd.f32 %v836_v56, %v1997_v0  ;;  %v852_v10 = vadd.f32 %v850_v49, %v848_v54  ;;  %1089 = vst [vmem:[%s2246_s30 + $0x68] sm:$0xff] (%p2343_p4), %v1088_v32 }
  0xaa   : > { %v986_v3 = vmul.f32 %v2092_v11, %v837_v23  ;;  %v988_v41 = vmul.f32 %v2098_v28, %v845_v27  ;;  %v966_v39 = vmul.f32 %v2049_v22, %v855_v14  ;;  %v846_v42 = vadd.f32 %v844_v58, %v2136_v57  ;;  %1091 = vst [vmem:[%s2246_s30 + $0x80] sm:$0xff] (%p2343_p4), %v1090_v46 }
  0xab   : > { %v964_v4 = vadd.f32 %v962_v50, %v960_v61  ;;  %v977_v13 = vadd.f32 %v975_v48, %v973_v24  ;;  %v856_v29 = vadd.f32 %v854_v21, %v852_v10  ;;  %v961_v15 = vmul.f32 %v2059_v35, %v838_v44  ;;  %1093 = vst [vmem:[%s2246_s30 + $0x88] sm:$0xff] (%p2343_p4), %v1092_v62  ;;  %v1108_v21 = vld [vmem:[%s1897_s12 + $0x88] sm:$0xff] (%p2343_p4) }
  0xac   : > { %v979_v31 = vmul.f32 %v2065_v51, %v855_v14  ;;  %v974_v0 = vmul.f32 %v2079_v43, %v838_v44  ;;  %v963_v11 = vmul.f32 %v2062_v38, %v846_v42  ;;  %v976_v28 = vmul.f32 %v2082_v53, %v846_v42  ;;  %1095 = vst [vmem:[%s2246_s30 + $0xa0] sm:$0xff] (%p2343_p4), %v1094_v20 }
  0xad   : > { %v968_v1 = vadd.f32 %v966_v39, %v964_v4  ;;  %v990_v8 = vadd.f32 %v988_v41, %v986_v3  ;;  %v967_v22 = vmul.f32 %v2076_v45, %v856_v29  ;;  %v980_v60 = vmul.f32 %v2089_v5, %v856_v29  ;;  %1097 = vst [vmem:[%s2246_s30 + $0xa8] sm:$0xff] (%p2343_p4), %v1096_v7 }
  0xae   : > { %v981_v57 = vadd.f32 %v979_v31, %v977_v13  ;;  %v992_v35 = vmul.f32 %v2101_v63, %v855_v14  ;;  %v965_v51 = vadd.f32 %v963_v11, %v961_v15  ;;  %v978_v43 = vadd.f32 %v976_v28, %v974_v0  ;;  %v1074_v63 = vld [vmem:[%s1897_s12] sm:$0xff] (%p2343_p4)  ;;  %1099 = vst [vmem:[%s2246_s30 + $0xc0] sm:$0xff] (%p2343_p4), %v1098_v36 }
  0xaf   : > { %1422 = vst [vmem:[%s2124_s17 + $0x60] sm:$0xff] %v968_v1  ;;  %v987_v19 = vmul.f32 %v2107_v33, %v838_v44  ;;  %v989_v38 = vmul.f32 %v2110_v47, %v846_v42  ;;  %v993_v9 = vmul.f32 %v2113_v55, %v856_v29  ;;  %1009 = sbr.rel (!%p2343_p4) target bundleno = 183 (0xb7), region = 116  ;;  %v1076_v33 = vld [vmem:[%s1897_s12 + $0x8] sm:$0xff] (%p2343_p4)  ;;  %v1078_v47 = vld [vmem:[%s1897_s12 + $0x10] sm:$0xff] (%p2343_p4)  ;;  %v1080_v55 = vld [vmem:[%s1897_s12 + $0x18] sm:$0xff] (%p2343_p4) }
  0xb0   : > { %1424 = vst [vmem:[%s2124_s17 + $0x70] sm:$0xff] %v981_v57  ;;  %v994_v53 = vadd.f32 %v992_v35, %v990_v8  ;;  %v969_v45 = vadd.f32 %v967_v22, %v965_v51  ;;  %v982_v25 = vadd.f32 %v980_v60, %v978_v43  ;;  %1075 = vst [vmem:[%s2246_s30] sm:$0xff] (%p2343_p4), %v1074_v63 }
  0xb1   : > { %v991_v26 = vadd.f32 %v989_v38, %v987_v19  ;;  %1077 = vst [vmem:[%s2246_s30 + $0x8] sm:$0xff] (%p2343_p4), %v1076_v33  ;;  %1079 = vst [vmem:[%s2246_s30 + $0x20] sm:$0xff] (%p2343_p4), %v1078_v47 }
  0xb2   : > { %1426 = vst [vmem:[%s2124_s17 + $0x80] sm:$0xff] %v994_v53  ;;  %1423 = vst [vmem:[%s2124_s17 + $0x68] sm:$0xff] %v969_v45 }
  0xb3   : > { %1425 = vst [vmem:[%s2124_s17 + $0x78] sm:$0xff] %v982_v25  ;;  %v995_v5 = vadd.f32 %v993_v9, %v991_v26  ;;  %1081 = vst [vmem:[%s2246_s30 + $0x28] sm:$0xff] (%p2343_p4), %v1080_v55 }
  0xb4   : > { %1101 = vst [vmem:[%s2246_s30 + $0xc8] sm:$0xff] (%p2343_p4), %v1100_v37  ;;  %1103 = vst [vmem:[%s2246_s30 + $0xe0] sm:$0xff] (%p2343_p4), %v1102_v17 }
  0xb5   : > { %1427 = vst [vmem:[%s2124_s17 + $0x88] sm:$0xff] %v995_v5  ;;  %1105 = vst [vmem:[%s2246_s30 + $0xe8] sm:$0xff] (%p2343_p4), %v1104_v16 }
  0xb6   : > { %1107 = vst [vmem:[%s2246_s30 + $0x100] sm:$0xff] %v1106_v6  ;;  %1109 = vst [vmem:[%s2246_s30 + $0x108] sm:$0xff] %v1108_v21 }
  0xb7 PF: > { %p2344_p5 = scmp.ne.s32.totalorder %s2341_s24, 0 }
  0xb8   : > { %s1437_s15 = sshll.u32 (%p2344_p5), %s1570_s18, 4  ;;  %v1180_v23 = vld [vmem:[%s2124_s17] sm:$0xff] (%p2344_p5)  ;;  %v1182_v52 = vld [vmem:[%s2124_s17 + $0x8] sm:$0xff] (%p2344_p5)  ;;  %v1184_v18 = vld [vmem:[%s2124_s17 + $0x10] sm:$0xff] (%p2344_p5) }
  0xb9   : > { %1115 = sbr.rel (!%p2344_p5) target bundleno = 195 (0xc3), region = 154  ;;  %s2290_s6 = scalar_lea.vmem (%p2344_p5), %s2339_s4, %s1437_s15  ;;  %v1186_v40 = vld [vmem:[%s2124_s17 + $0x18] sm:$0xff] (%p2344_p5)  ;;  %v1188_v27 = vld [vmem:[%s2124_s17 + $0x20] sm:$0xff] (%p2344_p5)  ;;  %v1190_v12 = vld [vmem:[%s2124_s17 + $0x28] sm:$0xff] (%p2344_p5) }
  0xba   : > { %1181 = vst [vmem:[%s2290_s6] sm:$0xff] (%p2344_p5), %v1180_v23  ;;  %1183 = vst [vmem:[%s2290_s6 + $0x8] sm:$0xff] (%p2344_p5), %v1182_v52  ;;  %v1192_v2 = vld [vmem:[%s2124_s17 + $0x30] sm:$0xff] (%p2344_p5)  ;;  %v1194_v54 = vld [vmem:[%s2124_s17 + $0x38] sm:$0xff] (%p2344_p5) }
  0xbb   : > { %1185 = vst [vmem:[%s2290_s6 + $0x20] sm:$0xff] (%p2344_p5), %v1184_v18  ;;  %1187 = vst [vmem:[%s2290_s6 + $0x28] sm:$0xff] (%p2344_p5), %v1186_v40  ;;  %v1196_v61 = vld [vmem:[%s2124_s17 + $0x40] sm:$0xff] (%p2344_p5)  ;;  %v1198_v56 = vld [vmem:[%s2124_s17 + $0x48] sm:$0xff] (%p2344_p5) }
  0xbc   : > { %1189 = vst [vmem:[%s2290_s6 + $0x40] sm:$0xff] (%p2344_p5), %v1188_v27  ;;  %1191 = vst [vmem:[%s2290_s6 + $0x48] sm:$0xff] (%p2344_p5), %v1190_v12  ;;  %v1200_v49 = vld [vmem:[%s2124_s17 + $0x50] sm:$0xff] (%p2344_p5)  ;;  %v1202_v24 = vld [vmem:[%s2124_s17 + $0x58] sm:$0xff] (%p2344_p5) }
  0xbd   : > { %1193 = vst [vmem:[%s2290_s6 + $0x60] sm:$0xff] (%p2344_p5), %v1192_v2  ;;  %1195 = vst [vmem:[%s2290_s6 + $0x68] sm:$0xff] (%p2344_p5), %v1194_v54  ;;  %v1204_v14 = vld [vmem:[%s2124_s17 + $0x60] sm:$0xff] (%p2344_p5)  ;;  %v1206_v50 = vld [vmem:[%s2124_s17 + $0x68] sm:$0xff] (%p2344_p5) }
  0xbe   : > { %1197 = vst [vmem:[%s2290_s6 + $0x80] sm:$0xff] (%p2344_p5), %v1196_v61  ;;  %1199 = vst [vmem:[%s2290_s6 + $0x88] sm:$0xff] (%p2344_p5), %v1198_v56  ;;  %v1208_v58 = vld [vmem:[%s2124_s17 + $0x70] sm:$0xff] (%p2344_p5)  ;;  %v1210_v48 = vld [vmem:[%s2124_s17 + $0x78] sm:$0xff] (%p2344_p5) }
  0xbf   : > { %1201 = vst [vmem:[%s2290_s6 + $0xa0] sm:$0xff] (%p2344_p5), %v1200_v49  ;;  %1203 = vst [vmem:[%s2290_s6 + $0xa8] sm:$0xff] (%p2344_p5), %v1202_v24  ;;  %v1212_v44 = vld [vmem:[%s2124_s17 + $0x80] sm:$0xff] (%p2344_p5)  ;;  %v1214_v10 = vld [vmem:[%s2124_s17 + $0x88] sm:$0xff] (%p2344_p5) }
  0xc0   : > { %1205 = vst [vmem:[%s2290_s6 + $0xc0] sm:$0xff] %v1204_v14  ;;  %1207 = vst [vmem:[%s2290_s6 + $0xc8] sm:$0xff] %v1206_v50 }
  0xc1   : > { %1209 = vst [vmem:[%s2290_s6 + $0xe0] sm:$0xff] %v1208_v58  ;;  %1211 = vst [vmem:[%s2290_s6 + $0xe8] sm:$0xff] %v1210_v48 }
  0xc2   : > { %1213 = vst [vmem:[%s2290_s6 + $0x100] sm:$0xff] %v1212_v44  ;;  %1215 = vst [vmem:[%s2290_s6 + $0x108] sm:$0xff] %v1214_v10 }
  0xc3 PF: > { %p13_p8 = scmp.ge.s32.totalorder %s1573_s19, 4   ;;  %s2345_s15 = smov %s1522_s16 }
  0xc4   : > { %s2346_s16 = smov %s1583_s22  ;;  %s2347_s17 = smov %s1573_s19 }
  0xc5   :  { %15 = sbr.rel (!%p13_p8) target bundleno = 2 (0x2), region = 282 }
  0xcc   :  { %1238 = vsyncpa [#allocation3], 1 }
  0xcd   :  { %1240 = vsyncpa [#allocation3 + $0x1], 1 }

</bundles_post_ra>
